<compile_context>
chip_gen: v7x
topology: tpu7x:2x2x1
jax: 0.10.0
libtpu: 0.0.40
codegen_flags: <defaults>
</compile_context>

<pallas_src>
import jax
import jax.numpy as jnp
from jax.experimental import pallas as pl
from jax.experimental.pallas import tpu as pltpu

RRELU_SLOPE = (1.0 / 8.0 + 1.0 / 3.0) / 2.0  # eval-mode RReLU negative slope
LANE = 128
MAX_TILE = 1024


def _rrelu(x):
    return jnp.where(x >= 0, x, RRELU_SLOPE * x)


def _round_up(x, m):
    return ((x + m - 1) // m) * m


def actor_kernel(x_ref,
                 w0_ref, b0_ref,
                 w1_ref, b1_ref,
                 w2_ref, b2_ref,
                 w3_ref, b3_ref,
                 out_ref):
    # bf16 MXU operands + f32 accumulation; RReLU/tanh in f32 on the VPU/EUP
    # (v5e has no bf16 VPU/EUP path).  Input cast happens here, in-kernel.
    x = x_ref[...].astype(jnp.bfloat16)                         # f32 -> bf16, free
    h = jnp.dot(x, w0_ref[...], preferred_element_type=jnp.float32) + b0_ref[...]
    h = _rrelu(h)
    h = jnp.dot(h.astype(jnp.bfloat16), w1_ref[...],
                preferred_element_type=jnp.float32) + b1_ref[...]
    h = _rrelu(h)
    h = jnp.dot(h.astype(jnp.bfloat16), w2_ref[...],
                preferred_element_type=jnp.float32) + b2_ref[...]
    h = _rrelu(h)
    logits = jnp.dot(h.astype(jnp.bfloat16), w3_ref[...],
                     preferred_element_type=jnp.float32) + b3_ref[...]
    out_ref[...] = jnp.tanh(logits).astype(out_ref.dtype)       # lane-dense bf16 store


def _num_tensorcores():
    """2 on v7x (2 TCs/chip), else 1.  Safe fallback to 1."""
    try:
        kind = jax.devices()[0].device_kind.lower()
    except Exception:
        return 1
    return 2 if "v7" in kind else 1


def _choose_batch_tile(B, num_cores=1, max_tile=MAX_TILE):
    """Large, 128-aligned tiles; >= num_cores balanced grid steps so the
    'parallel' batch axis can shard across TensorCores on v7x."""
    if B <= 16 or (num_cores <= 1 and B <= 128):
        return B                                   # single tile == full batch dim
    if B <= 128 * num_cores:
        # Small batch on a multi-TC chip: balance across cores, 16-row aligned.
        return _round_up(pl.cdiv(B, num_cores), 16)
    # Large batch: big tiles, step count a multiple of num_cores for balance.
    steps = max(num_cores, pl.cdiv(B, max_tile))
    steps = _round_up(steps, num_cores)
    tile = _round_up(pl.cdiv(B, steps), 128)
    return min(tile, max_tile)


def _prepare_params(params):
    """Zero-pad every layer's output width (and the next layer's input rows) to a
    multiple of 128 and cast weights to bf16.  Padded columns get zero weight and
    zero bias, and RReLU(0) = 0 flows through zero rows of the next weight, so
    real outputs are bit-for-bit unaffected.  state_size (K of layer 0) is left
    unpadded (padding it to 128 would 4x layer-0 MXU pushes for zero benefit)."""
    padded = []
    in_dim = params[0][0].shape[0]
    for w, b in params:
        out_pad = _round_up(w.shape[1], LANE)
        w_p = jnp.pad(w.astype(jnp.bfloat16),
                      ((0, in_dim - w.shape[0]), (0, out_pad - w.shape[1])))
        b_p = jnp.pad(b.astype(jnp.float32),
                      ((0, 0), (0, out_pad - b.shape[1])))
        padded.append((w_p, b_p))
        in_dim = out_pad
    return padded


def actor_forward(x, params, *, batch_tile=None):
    """x: [B, state_size] float32.  params: list of (W, b), W: [in, out], b: [1, out]."""
    B, state_size = x.shape
    action_size = params[-1][0].shape[1]

    padded_params = _prepare_params(params)
    out_pad = padded_params[-1][0].shape[1]

    if batch_tile is None:
        batch_tile = _choose_batch_tile(B, _num_tensorcores())

    flat_params = []
    for w, b in padded_params:
        flat_params.extend([w, b])

    grid = (pl.cdiv(B, batch_tile),)

    x_spec = pl.BlockSpec((batch_tile, state_size), lambda i: (i, 0))
    # Grid-invariant weights/biases: constant index_map -> DMA'd once, resident
    # in VMEM across all grid steps.
    param_specs = [pl.BlockSpec(p.shape, lambda i: (0, 0)) for p in flat_params]
    out_spec = pl.BlockSpec((batch_tile, out_pad), lambda i: (i, 0))

    flops = 2 * B * sum(w.shape[0] * w.shape[1] for w, _ in padded_params)
    bytes_accessed = (x.size * 4                                   # f32 input
                      + sum(int(p.size) * p.dtype.itemsize for p in flat_params)
                      + B * out_pad * 2)                           # bf16 output
    cost = pl.CostEstimate(flops=int(flops),
                           transcendentals=int(B * out_pad),       # tanh
                           bytes_accessed=int(bytes_accessed))

    out_padded = pl.pallas_call(
        actor_kernel,
        out_shape=jax.ShapeDtypeStruct((B, out_pad), jnp.bfloat16),
        grid_spec=pltpu.PrefetchScalarGridSpec(
            num_scalar_prefetch=0,
            grid=grid,
            in_specs=[x_spec] + param_specs,
            out_specs=out_spec,
        ),
        compiler_params=pltpu.CompilerParams(
            dimension_semantics=("parallel",)),
        cost_estimate=cost,
    )(x, *flat_params)

    # Tiny slice + upcast back to the module's f32 output dtype (reads the bf16
    # slab once — half the bytes of the previous f32 version — writes B x A f32).
    return out_padded[:, :action_size].astype(jnp.float32)


def init_actor_params(key, state_size, action_size, fc_sizes=(256, 128, 64)):
    """PyTorch-style uniform(-1/sqrt(fan_in), 1/sqrt(fan_in)) init, deterministic."""
    sizes = [state_size] + list(fc_sizes) + [action_size]
    params = []
    for i in range(len(sizes) - 1):
        fan_in, fan_out = sizes[i], sizes[i + 1]
        key, kw, kb = jax.random.split(key, 3)
        bound = 1.0 / jnp.sqrt(jnp.float32(fan_in))
        w = jax.random.uniform(kw, (fan_in, fan_out), jnp.float32, -bound, bound)
        b = jax.random.uniform(kb, (1, fan_out), jnp.float32, -bound, bound)
        params.append((w, b))
    return params


def actor_reference(x, params, *, match_kernel_dtypes=False):
    """Pure-JAX reference.  match_kernel_dtypes=True mirrors the kernel's
    bf16-operand / f32-accumulation strategy for a tight comparison."""
    h = x
    n = len(params)
    for i, (w, b) in enumerate(params):
        if match_kernel_dtypes:
            h = h.astype(jnp.bfloat16)
            w = w.astype(jnp.bfloat16)
        h = jnp.dot(h, w, preferred_element_type=jnp.float32) + b
        if i < n - 1:
            h = _rrelu(h)
    return jnp.tanh(h)


if __name__ == "__main__":
    key = jax.random.PRNGKey(0)
    state_size = 33     # Reacher-style continuous-control observation
    action_size = 4
    batch = 256

    k_params, k_x = jax.random.split(key)
    params = init_actor_params(k_params, state_size, action_size)
    x = jax.random.normal(k_x, (batch, state_size), jnp.float32)

    out = actor_forward(x, params)
    out = jax.block_until_ready(out)
    assert out.shape == (batch, action_size)
    assert out.dtype == jnp.float32

    # Kernel stores bf16 tanh values; compare with a tolerance that covers one
    # bf16 quantisation step on [-1, 1] (~8e-3) on top of matmul rounding.
    ref_matched = actor_reference(x, params, match_kernel_dtypes=True)
    ref_f32 = actor_reference(x, params, match_kernel_dtypes=False)
    assert jnp.allclose(out, ref_matched, atol=1e-2, rtol=1e-2), \
        "mismatch vs bf16-matched reference"
    assert jnp.allclose(out, ref_f32, atol=1e-1), \
        "mismatch vs f32 reference (sanity)"

    print("KERNEL_OK")
</pallas_src>

<mosaic_0001>
module attributes {stable_mosaic.version = 11 : i64} {
  func.func @actor_kernel(%arg0: i32, %arg1: memref<256x33xf32, #tpu.memory_space<vmem>>, %arg2: memref<33x256xbf16, #tpu.memory_space<vmem>>, %arg3: memref<1x256xf32, #tpu.memory_space<vmem>>, %arg4: memref<256x128xbf16, #tpu.memory_space<vmem>>, %arg5: memref<1x128xf32, #tpu.memory_space<vmem>>, %arg6: memref<128x128xbf16, #tpu.memory_space<vmem>>, %arg7: memref<1x128xf32, #tpu.memory_space<vmem>>, %arg8: memref<128x128xbf16, #tpu.memory_space<vmem>>, %arg9: memref<1x128xf32, #tpu.memory_space<vmem>>, %arg10: memref<256x128xbf16, #tpu.memory_space<vmem>>) attributes {dimension_semantics = [#tpu.dimension_semantics<parallel>], iteration_bounds = array<i64: 1>, scalar_prefetch = 0 : i64, scratch_operands = 0 : i64, tpu.core_type = #tpu.core_type<tc>, window_params = [{transform_indices = @transform_0, window_bounds = array<i64: 256, 33>}, {pipeline_mode = #tpu.pipeline_mode<synchronous>, transform_indices = @transform_1, window_bounds = array<i64: 33, 256>}, {pipeline_mode = #tpu.pipeline_mode<synchronous>, transform_indices = @transform_2, window_bounds = array<i64: 1, 256>}, {pipeline_mode = #tpu.pipeline_mode<synchronous>, transform_indices = @transform_3, window_bounds = array<i64: 256, 128>}, {pipeline_mode = #tpu.pipeline_mode<synchronous>, transform_indices = @transform_4, window_bounds = array<i64: 1, 128>}, {pipeline_mode = #tpu.pipeline_mode<synchronous>, transform_indices = @transform_5, window_bounds = array<i64: 128, 128>}, {pipeline_mode = #tpu.pipeline_mode<synchronous>, transform_indices = @transform_6, window_bounds = array<i64: 1, 128>}, {pipeline_mode = #tpu.pipeline_mode<synchronous>, transform_indices = @transform_7, window_bounds = array<i64: 128, 128>}, {pipeline_mode = #tpu.pipeline_mode<synchronous>, transform_indices = @transform_8, window_bounds = array<i64: 1, 128>}, {transform_indices = @transform_9, window_bounds = array<i64: 256, 128>}]} {
    %c0 = arith.constant 0 : index
    %c0_0 = arith.constant 0 : index
    %0 = vector.load %arg1[%c0, %c0_0] : memref<256x33xf32, #tpu.memory_space<vmem>>, vector<256x33xf32>
    %1 = arith.truncf %0 : vector<256x33xf32> to vector<256x33xbf16>
    %c0_1 = arith.constant 0 : index
    %c0_2 = arith.constant 0 : index
    %2 = vector.load %arg2[%c0_1, %c0_2] : memref<33x256xbf16, #tpu.memory_space<vmem>>, vector<33x256xbf16>
    %cst = arith.constant dense<0.000000e+00> : vector<256x256xf32>
    %3 = tpu.matmul %1, %2, %cst {dimension_numbers = #tpu.dot_dimension_numbers<[1], [0], [0], [1], [0, 0, 1, 1], [], []>} : vector<256x33xbf16>, vector<33x256xbf16>, vector<256x256xf32> -> vector<256x256xf32>
    %c0_3 = arith.constant 0 : index
    %c0_4 = arith.constant 0 : index
    %4 = vector.load %arg3[%c0_3, %c0_4] : memref<1x256xf32, #tpu.memory_space<vmem>>, vector<1x256xf32>
    %5 = vector.broadcast %4 : vector<1x256xf32> to vector<256x256xf32>
    %6 = arith.addf %3, %5 : vector<256x256xf32>
    %cst_5 = arith.constant 0.000000e+00 : f32
    %7 = vector.broadcast %cst_5 : f32 to vector<256x256xf32>
    %8 = arith.cmpf oge, %6, %7 : vector<256x256xf32>
    %cst_6 = arith.constant 0.229166672 : f32
    %9 = vector.broadcast %cst_6 : f32 to vector<256x256xf32>
    %10 = arith.mulf %9, %6 : vector<256x256xf32>
    %11 = arith.select %8, %6, %10 : vector<256x256xi1>, vector<256x256xf32>
    %12 = arith.truncf %11 : vector<256x256xf32> to vector<256x256xbf16>
    %c0_7 = arith.constant 0 : index
    %c0_8 = arith.constant 0 : index
    %13 = vector.load %arg4[%c0_7, %c0_8] : memref<256x128xbf16, #tpu.memory_space<vmem>>, vector<256x128xbf16>
    %cst_9 = arith.constant dense<0.000000e+00> : vector<256x128xf32>
    %14 = tpu.matmul %12, %13, %cst_9 {dimension_numbers = #tpu.dot_dimension_numbers<[1], [0], [0], [1], [0, 0, 1, 1], [], []>} : vector<256x256xbf16>, vector<256x128xbf16>, vector<256x128xf32> -> vector<256x128xf32>
    %c0_10 = arith.constant 0 : index
    %c0_11 = arith.constant 0 : index
    %15 = vector.load %arg5[%c0_10, %c0_11] : memref<1x128xf32, #tpu.memory_space<vmem>>, vector<1x128xf32>
    %16 = vector.broadcast %15 : vector<1x128xf32> to vector<256x128xf32>
    %17 = arith.addf %14, %16 : vector<256x128xf32>
    %cst_12 = arith.constant 0.000000e+00 : f32
    %18 = vector.broadcast %cst_12 : f32 to vector<256x128xf32>
    %19 = arith.cmpf oge, %17, %18 : vector<256x128xf32>
    %cst_13 = arith.constant 0.229166672 : f32
    %20 = vector.broadcast %cst_13 : f32 to vector<256x128xf32>
    %21 = arith.mulf %20, %17 : vector<256x128xf32>
    %22 = arith.select %19, %17, %21 : vector<256x128xi1>, vector<256x128xf32>
    %23 = arith.truncf %22 : vector<256x128xf32> to vector<256x128xbf16>
    %c0_14 = arith.constant 0 : index
    %c0_15 = arith.constant 0 : index
    %24 = vector.load %arg6[%c0_14, %c0_15] : memref<128x128xbf16, #tpu.memory_space<vmem>>, vector<128x128xbf16>
    %cst_16 = arith.constant dense<0.000000e+00> : vector<256x128xf32>
    %25 = tpu.matmul %23, %24, %cst_16 {dimension_numbers = #tpu.dot_dimension_numbers<[1], [0], [0], [1], [0, 0, 1, 1], [], []>} : vector<256x128xbf16>, vector<128x128xbf16>, vector<256x128xf32> -> vector<256x128xf32>
    %c0_17 = arith.constant 0 : index
    %c0_18 = arith.constant 0 : index
    %26 = vector.load %arg7[%c0_17, %c0_18] : memref<1x128xf32, #tpu.memory_space<vmem>>, vector<1x128xf32>
    %27 = vector.broadcast %26 : vector<1x128xf32> to vector<256x128xf32>
    %28 = arith.addf %25, %27 : vector<256x128xf32>
    %cst_19 = arith.constant 0.000000e+00 : f32
    %29 = vector.broadcast %cst_19 : f32 to vector<256x128xf32>
    %30 = arith.cmpf oge, %28, %29 : vector<256x128xf32>
    %cst_20 = arith.constant 0.229166672 : f32
    %31 = vector.broadcast %cst_20 : f32 to vector<256x128xf32>
    %32 = arith.mulf %31, %28 : vector<256x128xf32>
    %33 = arith.select %30, %28, %32 : vector<256x128xi1>, vector<256x128xf32>
    %34 = arith.truncf %33 : vector<256x128xf32> to vector<256x128xbf16>
    %c0_21 = arith.constant 0 : index
    %c0_22 = arith.constant 0 : index
    %35 = vector.load %arg8[%c0_21, %c0_22] : memref<128x128xbf16, #tpu.memory_space<vmem>>, vector<128x128xbf16>
    %cst_23 = arith.constant dense<0.000000e+00> : vector<256x128xf32>
    %36 = tpu.matmul %34, %35, %cst_23 {dimension_numbers = #tpu.dot_dimension_numbers<[1], [0], [0], [1], [0, 0, 1, 1], [], []>} : vector<256x128xbf16>, vector<128x128xbf16>, vector<256x128xf32> -> vector<256x128xf32>
    %c0_24 = arith.constant 0 : index
    %c0_25 = arith.constant 0 : index
    %37 = vector.load %arg9[%c0_24, %c0_25] : memref<1x128xf32, #tpu.memory_space<vmem>>, vector<1x128xf32>
    %38 = vector.broadcast %37 : vector<1x128xf32> to vector<256x128xf32>
    %39 = arith.addf %36, %38 : vector<256x128xf32>
    %40 = math.tanh %39 : vector<256x128xf32>
    %41 = arith.truncf %40 : vector<256x128xf32> to vector<256x128xbf16>
    %c0_26 = arith.constant 0 : index
    %c0_27 = arith.constant 0 : index
    %42 = vector.load %arg10[%c0_26, %c0_27] : memref<256x128xbf16, #tpu.memory_space<vmem>>, vector<256x128xbf16>
    tpu.vector_store %arg10[%c0_26, %c0_27], %41 {strides = array<i32>} : memref<256x128xbf16, #tpu.memory_space<vmem>>, vector<256x128xbf16>,
    return
  }
  func.func @transform_0(%arg0: i32) -> (i32, i32) {
    %c0_i32 = arith.constant 0 : i32
    %c0_i32_0 = arith.constant 0 : i32
    return %arg0, %c0_i32 : i32, i32
  }
  func.func @transform_1(%arg0: i32) -> (i32, i32) {
    %c0_i32 = arith.constant 0 : i32
    %c0_i32_0 = arith.constant 0 : i32
    %c0_i32_1 = arith.constant 0 : i32
    return %c0_i32, %c0_i32_0 : i32, i32
  }
  func.func @transform_2(%arg0: i32) -> (i32, i32) {
    %c0_i32 = arith.constant 0 : i32
    %c0_i32_0 = arith.constant 0 : i32
    %c0_i32_1 = arith.constant 0 : i32
    return %c0_i32, %c0_i32_0 : i32, i32
  }
  func.func @transform_3(%arg0: i32) -> (i32, i32) {
    %c0_i32 = arith.constant 0 : i32
    %c0_i32_0 = arith.constant 0 : i32
    %c0_i32_1 = arith.constant 0 : i32
    return %c0_i32, %c0_i32_0 : i32, i32
  }
  func.func @transform_4(%arg0: i32) -> (i32, i32) {
    %c0_i32 = arith.constant 0 : i32
    %c0_i32_0 = arith.constant 0 : i32
    %c0_i32_1 = arith.constant 0 : i32
    return %c0_i32, %c0_i32_0 : i32, i32
  }
  func.func @transform_5(%arg0: i32) -> (i32, i32) {
    %c0_i32 = arith.constant 0 : i32
    %c0_i32_0 = arith.constant 0 : i32
    %c0_i32_1 = arith.constant 0 : i32
    return %c0_i32, %c0_i32_0 : i32, i32
  }
  func.func @transform_6(%arg0: i32) -> (i32, i32) {
    %c0_i32 = arith.constant 0 : i32
    %c0_i32_0 = arith.constant 0 : i32
    %c0_i32_1 = arith.constant 0 : i32
    return %c0_i32, %c0_i32_0 : i32, i32
  }
  func.func @transform_7(%arg0: i32) -> (i32, i32) {
    %c0_i32 = arith.constant 0 : i32
    %c0_i32_0 = arith.constant 0 : i32
    %c0_i32_1 = arith.constant 0 : i32
    return %c0_i32, %c0_i32_0 : i32, i32
  }
  func.func @transform_8(%arg0: i32) -> (i32, i32) {
    %c0_i32 = arith.constant 0 : i32
    %c0_i32_0 = arith.constant 0 : i32
    %c0_i32_1 = arith.constant 0 : i32
    return %c0_i32, %c0_i32_0 : i32, i32
  }
  func.func @transform_9(%arg0: i32) -> (i32, i32) {
    %c0_i32 = arith.constant 0 : i32
    %c0_i32_0 = arith.constant 0 : i32
    return %arg0, %c0_i32 : i32, i32
  }
}

</mosaic_0001>

<bundles_post_ra>
// kernel: tpu_custom_call.1
= control target key start
LH: loop header
LB: loop body
LE: loop exit
PB: predicated region body
PF: predicated region fallthrough
CT: control target
= control target key end

     0   :  { %vm173_vm0 = vcmask 1040384   ;;  %v2411_v2 = vmov 0   ;;  %vm124_vm1 = vcmask 269312   ;;  %s2899_s0 = inlined_call_operand.vmem [shape: f32[256,33], index: 0, kind: input, shape index: {}]   ;;  %s2900_s1 = inlined_call_operand.vmem [shape: bf16[33,256], index: 1, kind: input, shape index: {}]   ;;  %s2901_s2 = inlined_call_operand.vmem [shape: f32[1,256], index: 2, kind: input, shape index: {}]   ;;  %s2902_s3 = inlined_call_operand.vmem [shape: bf16[256,128], index: 3, kind: input, shape index: {}]   ;;  %s2903_s4 = inlined_call_operand.vmem [shape: f32[1,128], index: 4, kind: input, shape index: {}]   ;;  %s2904_s5 = inlined_call_operand.vmem [shape: bf16[128,128], index: 5, kind: input, shape index: {}]   ;;  %s2905_s6 = inlined_call_operand.vmem [shape: f32[1,128], index: 6, kind: input, shape index: {}]   ;;  %s2906_s7 = inlined_call_operand.vmem [shape: bf16[128,128], index: 7, kind: input, shape index: {}]   ;;  %s2907_s8 = inlined_call_operand.vmem [shape: f32[1,128], index: 8, kind: input, shape index: {}]   ;;  %s2908_s9 = inlined_call_operand.hbm [shape: bf16[256,128], index: 9, kind: output, shape index: {}]  }
   0x1   :  { %v2283_v0 = vld [vmem:[%s2900_s1 + $0x4] ss:$8 sps:$4 sm:$0xff]   ;;  %v2285_v1 = vld [vmem:[%s2900_s1] ss:$8 sps:$4 sm:$0xff]   ;;  %214 = vmatprep.mubr.bf16.mxu0 %v2411_v2  ;;  %v2286_v3 = vld [vmem:[%s2900_s1 + $0x14] ss:$8 sps:$4 sm:$0xff]  }
   0x2   :  { %182 = vmatprep.subr.bf16.mxu0 %v2283_v0  ;;  %v86_v4 = vld [vmem:[%s2900_s1 + $0x20] sm:$0x11]  ;;  %v175_v5 = vsel %vm173_vm0, 65535, %v2411_v2  ;;  %v2288_v6 = vld [vmem:[%s2900_s1 + $0x10] ss:$8 sps:$4 sm:$0xff]   ;;  %v35_v12 = vld [vmem:[%s2899_s0 + $0x8] sm:$0xff] }
   0x3   :  { %183 = vmatpush1.bf16.msra.mxu0 %v2285_v1  ;;  %v1796_v7 = vcombine.high %v86_v4, %v86_v4  ;;  %v1795_v8 = vcombine.low %v86_v4, %v86_v4  ;;  %v34_v11 = vld [vmem:[%s2899_s0] sm:$0xff]  ;;  %v36_v14 = vld [vmem:[%s2899_s0 + $0x10] sm:$0xff]  ;;  %v37_v15 = vld [vmem:[%s2899_s0 + $0x18] sm:$0xff] }
   0x4   :  { %184 = vmatprep.subr.bf16.mxu0 %v2286_v3  ;;  %v66_v13 = vpack.c.bf16 %v35_v12, %v34_v11  ;;  %v2291_v16 = vld [vmem:[%s2902_s3 + $0x40] sm:$0xff]   ;;  %v2293_v18 = vld [vmem:[%s2902_s3 + $0x48] sm:$0xff]   ;;  %v67_v20 = vpack.c.bf16 %v37_v15, %v36_v14  ;;  %v2295_v21 = vld [vmem:[%s2902_s3 + $0x50] sm:$0xff]  }
   0x5   :  { %v180_v9 = vand.u32 %v1796_v7, %v175_v5  ;;  %v177_v10 = vand.u32 %v1795_v8, %v175_v5  ;;  %v2292_v17 = vld [vmem:[%s2902_s3] sm:$0xff]   ;;  %2007 = vmatprep.subr.bf16.mxu1 %v2291_v16  ;;  %v2294_v19 = vld [vmem:[%s2902_s3 + $0x8] sm:$0xff]   ;;  %v2296_v23 = vld [vmem:[%s2902_s3 + $0x10] sm:$0xff]  }
   0x6   :  { %2008 = vmatpush3.bf16.msra.mxu1 %v2292_v17  ;;  %v38_v22 = vld [vmem:[%s2899_s0 + $0x20] sm:$0xff]  ;;  %v2297_v24 = vld [vmem:[%s2902_s3 + $0x58] sm:$0xff]   ;;  %v39_v25 = vld [vmem:[%s2899_s0 + $0x28] sm:$0xff] }
   0x7   :  { %185 = vmatpush1.bf16.msra.mxu0 %v2288_v6  ;;  %2009 = vmatprep.subr.bf16.mxu1 %v2293_v18  ;;  %v2298_v26 = vld [vmem:[%s2902_s3 + $0x18] sm:$0xff]   ;;  %v2299_v27 = vld [vmem:[%s2902_s3 + $0x60] sm:$0xff]   ;;  %v68_v28 = vpack.c.bf16 %v39_v25, %v38_v22  ;;  %v40_v30 = vld [vmem:[%s2899_s0 + $0x30] sm:$0xff] }
   0x8   :  { %186 = vmatprep.subr.bf16.mxu0 %v180_v9  ;;  %v2300_v29 = vld [vmem:[%s2902_s3 + $0x20] sm:$0xff]   ;;  %v41_v31 = vld [vmem:[%s2899_s0 + $0x38] sm:$0xff] }
   0x9   :  { %v69_v32 = vpack.c.bf16 %v41_v31, %v40_v30 }
   0xa   :  { %2010 = vmatpush3.bf16.msra.mxu1 %v2294_v19 }
   0xb   :  { %187 = vmatpush1.bf16.msra.mxu0 %v177_v10  ;;  %2011 = vmatprep.subr.bf16.mxu1 %v2295_v21 }
   0xe   :  { %1797 = vmatmul.mubr.msk.bf16.vlgmr.msra.gmra.mrb[0].mxu0 %vm124_vm1, %v66_v13  ;;  %2012 = vmatpush3.bf16.msra.mxu1 %v2296_v23 }
   0xf   :  { %224 = vmatprep.mubr.bf16.mxu0 %v2411_v2  ;;  %2013 = vmatprep.subr.bf16.mxu1 %v2297_v24 }
  0x12   :  { %2014 = vmatpush3.bf16.msra.mxu1 %v2298_v26 }
  0x13   :  { %2015 = vmatprep.subr.bf16.mxu1 %v2299_v27 }
  0x16   :  { %1798 = vmatmul.mubr.msk.bf16.gmra.mrb[4].mxu0 %vm124_vm1, %v67_v20  ;;  %2016 = vmatpush3.bf16.msra.mxu1 %v2300_v29 }
  0x17   :  { %234 = vmatprep.mubr.bf16.mxu0 %v2411_v2 }
  0x1e   :  { %1799 = vmatmul.mubr.msk.bf16.gmra.mrb[8].mxu0 %vm124_vm1, %v68_v28 }
  0x1f   :  { %244 = vmatprep.mubr.bf16.mxu0 %v2411_v2 }
  0x26   :  { %1800 = vmatmul.mubr.msk.bf16.gmra.mrb[12].mxu0 %vm124_vm1, %v69_v32 }
  0x27   :  { %14 = vsyncpa [#allocation3], 0  ;;  %254 = vmatprep.mubr.bf16.mxu0 %v2411_v2  ;;  %v42_v33 = vld [vmem:[%s2899_s0 + $0x40] sm:$0xff]  ;;  %v43_v34 = vld [vmem:[%s2899_s0 + $0x48] sm:$0xff]  ;;  %v89_v12 = vlaneseq }
  0x28   :  { %v70_v35 = vpack.c.bf16 %v43_v34, %v42_v33  ;;  %v44_v36 = vld [vmem:[%s2899_s0 + $0x50] sm:$0xff]  ;;  %v45_v37 = vld [vmem:[%s2899_s0 + $0x58] sm:$0xff]  ;;  %v46_v39 = vld [vmem:[%s2899_s0 + $0x60] sm:$0xff] }
  0x29   :  { %v71_v38 = vpack.c.bf16 %v45_v37, %v44_v36  ;;  %v47_v40 = vld [vmem:[%s2899_s0 + $0x68] sm:$0xff]  ;;  %v48_v42 = vld [vmem:[%s2899_s0 + $0x70] sm:$0xff]  ;;  %v49_v43 = vld [vmem:[%s2899_s0 + $0x78] sm:$0xff]  ;;  %v90_v13 = vshrl.u32 %v89_v12, 7 }
  0x2a   :  { %v72_v41 = vpack.c.bf16 %v47_v40, %v46_v39  ;;  %v73_v44 = vpack.c.bf16 %v49_v43, %v48_v42  ;;  %v50_v45 = vld [vmem:[%s2899_s0 + $0x80] sm:$0xff]  ;;  %v51_v46 = vld [vmem:[%s2899_s0 + $0x88] sm:$0xff]  ;;  %v52_v48 = vld [vmem:[%s2899_s0 + $0x90] sm:$0xff] }
  0x2b   :  { %v74_v47 = vpack.c.bf16 %v51_v46, %v50_v45  ;;  %v53_v49 = vld [vmem:[%s2899_s0 + $0x98] sm:$0xff]  ;;  %v54_v51 = vld [vmem:[%s2899_s0 + $0xa0] sm:$0xff]  ;;  %v55_v52 = vld [vmem:[%s2899_s0 + $0xa8] sm:$0xff]  ;;  %v91_v14 = vsub.s32 0, %v90_v13  ;;  %v95_v16 = vsub.s32 1, %v90_v13 }
  0x2c   :  { %v75_v50 = vpack.c.bf16 %v53_v49, %v52_v48  ;;  %v76_v53 = vpack.c.bf16 %v55_v52, %v54_v51  ;;  %v56_v54 = vld [vmem:[%s2899_s0 + $0xb0] sm:$0xff]  ;;  %v57_v55 = vld [vmem:[%s2899_s0 + $0xb8] sm:$0xff]  ;;  %v2301_v56 = vld [vmem:[%s2902_s3 + $0x68] sm:$0xff]  }
  0x2d   :  { %v2302_v57 = vld [vmem:[%s2902_s3 + $0x28] sm:$0xff]   ;;  %2017 = vmatprep.subr.bf16.mxu1 %v2301_v56  ;;  %v77_v58 = vpack.c.bf16 %v57_v55, %v56_v54  ;;  %v2303_v59 = vld [vmem:[%s2902_s3 + $0x70] sm:$0xff]   ;;  %v58_v61 = vld [vmem:[%s2899_s0 + $0xc0] sm:$0xff] }
  0x2e   :  { %1801 = vmatmul.mubr.msk.bf16.gmra.mrb[16].mxu0 %vm124_vm1, %v70_v35  ;;  %2018 = vmatpush3.bf16.msra.mxu1 %v2302_v57  ;;  %v2304_v60 = vld [vmem:[%s2902_s3 + $0x30] sm:$0xff]   ;;  %v59_v62 = vld [vmem:[%s2899_s0 + $0xc8] sm:$0xff]  ;;  %v2305_v63 = vld [vmem:[%s2902_s3 + $0x78] sm:$0xff]  }
  0x2f   :  { %264 = vmatprep.mubr.bf16.mxu0 %v2411_v2  ;;  %2019 = vmatprep.subr.bf16.mxu1 %v2303_v59  ;;  %v2306_v0 = vld [vmem:[%s2902_s3 + $0x38] sm:$0xff]   ;;  %v78_v1 = vpack.c.bf16 %v59_v62, %v58_v61  ;;  %v60_v3 = vld [vmem:[%s2899_s0 + $0xd0] sm:$0xff]  ;;  %v62_v6 = vld [vmem:[%s2899_s0 + $0xe0] sm:$0xff] }
  0x30   :  { %v61_v4 = vld [vmem:[%s2899_s0 + $0xd8] sm:$0xff]  ;;  %v63_v7 = vld [vmem:[%s2899_s0 + $0xe8] sm:$0xff]  ;;  %v64_v9 = vld [vmem:[%s2899_s0 + $0xf0] sm:$0xff] }
  0x31   :  { %v79_v5 = vpack.c.bf16 %v61_v4, %v60_v3  ;;  %v80_v8 = vpack.c.bf16 %v63_v7, %v62_v6  ;;  %v65_v10 = vld [vmem:[%s2899_s0 + $0xf8] sm:$0xff]  ;;  %v87_v15 = vld [vmem:[%s2901_s2] sm:$0x3]  ;;  %v2308_v29 = vld [vmem:[%s2904_s5 + $0x8] sm:$0xff]  }
  0x32   :  { %2020 = vmatpush3.bf16.msra.mxu1 %v2304_v60  ;;  %v81_v11 = vpack.c.bf16 %v65_v10, %v64_v9  ;;  %v2662_v17 = vrot.slane %v87_v15, %v95_v16  ;;  %v2307_v28 = vld [vmem:[%s2904_s5] sm:$0xff]   ;;  %v2310_v49 = vld [vmem:[%s2904_s5 + $0x18] sm:$0xff]  }
  0x33   :  { %2021 = vmatprep.subr.bf16.mxu1 %v2305_v63  ;;  %2167 = vmatprep.subr.bf16.mxu0 %v2307_v28 }
  0x34   :  { %2168 = vmatpush3.bf16.msra.mxu0 %v2307_v28 }
  0x35   :  { %2169 = vmatprep.subr.bf16.mxu0 %v2308_v29 }
  0x36   :  { %1802 = vmatmul.mubr.msk.bf16.gmra.mrb[20].mxu0 %vm124_vm1, %v71_v38  ;;  %2022 = vmatpush3.bf16.msra.mxu1 %v2306_v0  ;;  %v2309_v38 = vld [vmem:[%s2904_s5 + $0x10] sm:$0xff]  }
  0x37   :  { %274 = vmatprep.mubr.bf16.mxu0 %v2411_v2 }
  0x38   :  { %2170 = vmatpush3.bf16.msra.mxu0 %v2308_v29 }
  0x39   :  { %2171 = vmatprep.subr.bf16.mxu0 %v2309_v38 }
  0x3c   :  { %2172 = vmatpush3.bf16.msra.mxu0 %v2309_v38 }
  0x3d   :  { %2173 = vmatprep.subr.bf16.mxu0 %v2310_v49 }
  0x3e   :  { %1803 = vmatmul.mubr.msk.bf16.gmra.mrb[24].mxu0 %vm124_vm1, %v72_v41 }
  0x3f   :  { %284 = vmatprep.mubr.bf16.mxu0 %v2411_v2 }
  0x40   :  { %2174 = vmatpush3.bf16.msra.mxu0 %v2310_v49 }
  0x46   :  { %1804 = vmatmul.mubr.msk.bf16.gmra.mrb[28].mxu0 %vm124_vm1, %v73_v44 }
  0x47   :  { %294 = vmatprep.mubr.bf16.mxu0 %v2411_v2 }
  0x4e   :  { %1805 = vmatmul.mubr.msk.bf16.gmra.mrb[32].mxu0 %vm124_vm1, %v74_v47 }
  0x4f   :  { %304 = vmatprep.mubr.bf16.mxu0 %v2411_v2 }
  0x56   :  { %1806 = vmatmul.mubr.msk.bf16.gmra.mrb[36].mxu0 %vm124_vm1, %v75_v50 }
  0x57   :  { %314 = vmatprep.mubr.bf16.mxu0 %v2411_v2 }
  0x5e   :  { %1807 = vmatmul.mubr.msk.bf16.gmra.mrb[40].mxu0 %vm124_vm1, %v76_v53 }
  0x5f   :  { %324 = vmatprep.mubr.bf16.mxu0 %v2411_v2 }
  0x66   :  { %1808 = vmatmul.mubr.msk.bf16.gmra.mrb[44].mxu0 %vm124_vm1, %v77_v58 }
  0x67   :  { %334 = vmatprep.mubr.bf16.mxu0 %v2411_v2 }
  0x6e   :  { %1809 = vmatmul.mubr.msk.bf16.gmra.mrb[48].mxu0 %vm124_vm1, %v78_v1 }
  0x6f   :  { %344 = vmatprep.mubr.bf16.mxu0 %v2411_v2 }
  0x76   :  { %1810 = vmatmul.mubr.msk.bf16.gmra.mrb[52].mxu0 %vm124_vm1, %v79_v5 }
  0x77   :  { %354 = vmatprep.mubr.bf16.mxu0 %v2411_v2 }
  0x7e   :  { %1811 = vmatmul.mubr.msk.bf16.gmra.mrb[56].mxu0 %vm124_vm1, %v80_v8 }
  0x7f   :  { %364 = vmatprep.mubr.bf16.mxu0 %v2411_v2  ;;  %v2660_v2 = vrot.slane %v87_v15, %v91_v14 }
  0x86   :  { %1812 = vmatmul.mubr.msk.bf16.gmra.mrb[60].mxu0 %vm124_vm1, %v81_v11 }
  0xe1   :  { %v216_v18 = vpop.f32.mrb[0].mxu0 }
  0xe2   :  { %v217_v19 = vadd.f32 %v216_v18, %v2660_v2  ;;  %v218_v20 = vpop.f32.mrb[1].mxu0 }
  0xe3   :  { %v219_v21 = vadd.f32 %v218_v20, %v2662_v17  ;;  %v220_v22 = vpop.f32.mrb[2].mxu0 }
  0xe4   :  { %v439_v23 = vmul.f32 0.22916667, %v217_v19  ;;  %v221_v24 = vadd.f32 %v220_v22, %v2660_v2  ;;  %v222_v25 = vpop.f32.mrb[3].mxu0  ;;  %vm375_vm2 = vcmp.ge.f32.partialorder %v217_v19, 0.0 }
  0xe5   :  { %v440_v26 = vmul.f32 0.22916667, %v219_v21  ;;  %v223_v27 = vadd.f32 %v222_v25, %v2662_v17  ;;  %vm376_vm4 = vcmp.ge.f32.partialorder %v219_v21, 0.0 }
  0xe6   :  { %vm377_vm3 = vcmp.ge.f32.partialorder %v221_v24, 0.0  ;;  %v441_v30 = vmul.f32 0.22916667, %v221_v24  ;;  %v503_v32 = vsel %vm375_vm2, %v217_v19, %v439_v23 }
  0xe7   :  { %v442_v31 = vmul.f32 0.22916667, %v223_v27  ;;  %vm378_vm5 = vcmp.ge.f32.partialorder %v223_v27, 0.0  ;;  %v504_v35 = vsel %vm376_vm4, %v219_v21, %v440_v26 }
  0xe8   :  { %v505_v33 = vsel %vm377_vm3, %v221_v24, %v441_v30 }
  0xe9   :  { %v226_v34 = vpop.f32.mrb[4].mxu0  ;;  %v506_v36 = vsel %vm378_vm5, %v223_v27, %v442_v31  ;;  %v567_v37 = vpack.c.bf16 %v505_v33, %v503_v32 }
  0xea   :  { %v227_v39 = vadd.f32 %v226_v34, %v2660_v2  ;;  %v228_v40 = vpop.f32.mrb[5].mxu0  ;;  %v568_v41 = vpack.c.bf16 %v506_v36, %v504_v35 }
  0xeb   :  { %v229_v42 = vadd.f32 %v228_v40, %v2662_v17  ;;  %v230_v43 = vpop.f32.mrb[6].mxu0 }
  0xec   :  { %v443_v44 = vmul.f32 0.22916667, %v227_v39  ;;  %v231_v45 = vadd.f32 %v230_v43, %v2660_v2  ;;  %v232_v46 = vpop.f32.mrb[7].mxu0  ;;  %766 = vmatprep.mubr.bf16.mxu1 %v568_v41  ;;  %vm379_vm6 = vcmp.ge.f32.partialorder %v227_v39, 0.0 }
  0xed   :  { %v444_v47 = vmul.f32 0.22916667, %v229_v42  ;;  %v233_v48 = vadd.f32 %v232_v46, %v2662_v17  ;;  %767 = vmatmul.mubr.bf16.vlgmr.msra.gmra.mrb[0].mxu1 %v567_v37  ;;  %vm380_vm7 = vcmp.ge.f32.partialorder %v229_v42, 0.0 }
  0xee   :  { %vm381_vm8 = vcmp.ge.f32.partialorder %v231_v45, 0.0  ;;  %v445_v50 = vmul.f32 0.22916667, %v231_v45  ;;  %v507_v52 = vsel %vm379_vm6, %v227_v39, %v443_v44 }
  0xef   :  { %vm382_vm9 = vcmp.ge.f32.partialorder %v233_v48, 0.0  ;;  %v446_v51 = vmul.f32 0.22916667, %v233_v48  ;;  %v508_v55 = vsel %vm380_vm7, %v229_v42, %v444_v47 }
  0xf0   :  { %v509_v53 = vsel %vm381_vm8, %v231_v45, %v445_v50 }
  0xf1   :  { %v236_v54 = vpop.f32.mrb[8].mxu0  ;;  %v510_v56 = vsel %vm382_vm9, %v233_v48, %v446_v51  ;;  %v569_v57 = vpack.c.bf16 %v509_v53, %v507_v52 }
  0xf2   :  { %v237_v58 = vadd.f32 %v236_v54, %v2660_v2  ;;  %v238_v59 = vpop.f32.mrb[9].mxu0  ;;  %v570_v60 = vpack.c.bf16 %v510_v56, %v508_v55 }
  0xf3   :  { %v239_v61 = vadd.f32 %v238_v59, %v2662_v17  ;;  %v240_v62 = vpop.f32.mrb[10].mxu0 }
  0xf4   :  { %v447_v63 = vmul.f32 0.22916667, %v237_v58  ;;  %v241_v0 = vadd.f32 %v240_v62, %v2660_v2  ;;  %v242_v1 = vpop.f32.mrb[11].mxu0  ;;  %774 = vmatprep.mubr.bf16.mxu1 %v570_v60  ;;  %vm383_vm10 = vcmp.ge.f32.partialorder %v237_v58, 0.0 }
  0xf5   :  { %v448_v3 = vmul.f32 0.22916667, %v239_v61  ;;  %v243_v4 = vadd.f32 %v242_v1, %v2662_v17  ;;  %775 = vmatmul.mubr.bf16.gmra.mrb[4].mxu1 %v569_v57  ;;  %vm384_vm11 = vcmp.ge.f32.partialorder %v239_v61, 0.0 }
  0xf6   :  { %vm385_vm12 = vcmp.ge.f32.partialorder %v241_v0, 0.0  ;;  %v449_v5 = vmul.f32 0.22916667, %v241_v0  ;;  %v511_v7 = vsel %vm383_vm10, %v237_v58, %v447_v63 }
  0xf7   :  { %vm386_vm13 = vcmp.ge.f32.partialorder %v243_v4, 0.0  ;;  %v450_v6 = vmul.f32 0.22916667, %v243_v4  ;;  %v512_v10 = vsel %vm384_vm11, %v239_v61, %v448_v3 }
  0xf8   :  { %v513_v8 = vsel %vm385_vm12, %v241_v0, %v449_v5 }
  0xf9   :  { %v246_v9 = vpop.f32.mrb[12].mxu0  ;;  %v514_v11 = vsel %vm386_vm13, %v243_v4, %v450_v6  ;;  %v571_v12 = vpack.c.bf16 %v513_v8, %v511_v7 }
  0xfa   :  { %v247_v13 = vadd.f32 %v246_v9, %v2660_v2  ;;  %v248_v14 = vpop.f32.mrb[13].mxu0  ;;  %v572_v15 = vpack.c.bf16 %v514_v11, %v512_v10 }
  0xfb   :  { %v249_v16 = vadd.f32 %v248_v14, %v2662_v17  ;;  %v250_v18 = vpop.f32.mrb[14].mxu0 }
  0xfc   :  { %v451_v19 = vmul.f32 0.22916667, %v247_v13  ;;  %v251_v20 = vadd.f32 %v250_v18, %v2660_v2  ;;  %v252_v21 = vpop.f32.mrb[15].mxu0  ;;  %782 = vmatprep.mubr.bf16.mxu1 %v572_v15  ;;  %vm387_vm14 = vcmp.ge.f32.partialorder %v247_v13, 0.0 }
  0xfd   :  { %v452_v22 = vmul.f32 0.22916667, %v249_v16  ;;  %v253_v23 = vadd.f32 %v252_v21, %v2662_v17  ;;  %783 = vmatmul.mubr.bf16.gmra.mrb[8].mxu1 %v571_v12  ;;  %vm388_vm15 = vcmp.ge.f32.partialorder %v249_v16, 0.0 }
  0xfe   :  { %vm389_vm0 = vcmp.ge.f32.partialorder %v251_v20, 0.0  ;;  %v453_v24 = vmul.f32 0.22916667, %v251_v20  ;;  %v515_v26 = vsel %vm387_vm14, %v247_v13, %v451_v19 }
  0xff   :  { %vm390_vm1 = vcmp.ge.f32.partialorder %v253_v23, 0.0  ;;  %v454_v25 = vmul.f32 0.22916667, %v253_v23  ;;  %v516_v29 = vsel %vm388_vm15, %v249_v16, %v452_v22 }
 0x100   :  { %v517_v27 = vsel %vm389_vm0, %v251_v20, %v453_v24 }
 0x101   :  { %v256_v28 = vpop.f32.mrb[16].mxu0  ;;  %v518_v30 = vsel %vm390_vm1, %v253_v23, %v454_v25  ;;  %v573_v31 = vpack.c.bf16 %v517_v27, %v515_v26 }
 0x102   :  { %v257_v32 = vadd.f32 %v256_v28, %v2660_v2  ;;  %v258_v33 = vpop.f32.mrb[17].mxu0  ;;  %v574_v34 = vpack.c.bf16 %v518_v30, %v516_v29 }
 0x103   :  { %v259_v35 = vadd.f32 %v258_v33, %v2662_v17  ;;  %v260_v36 = vpop.f32.mrb[18].mxu0 }
 0x104   :  { %v455_v37 = vmul.f32 0.22916667, %v257_v32  ;;  %v261_v38 = vadd.f32 %v260_v36, %v2660_v2  ;;  %v262_v39 = vpop.f32.mrb[19].mxu0  ;;  %790 = vmatprep.mubr.bf16.mxu1 %v574_v34  ;;  %vm391_vm2 = vcmp.ge.f32.partialorder %v257_v32, 0.0 }
 0x105   :  { %v456_v40 = vmul.f32 0.22916667, %v259_v35  ;;  %v263_v41 = vadd.f32 %v262_v39, %v2662_v17  ;;  %791 = vmatmul.mubr.bf16.gmra.mrb[12].mxu1 %v573_v31  ;;  %vm392_vm3 = vcmp.ge.f32.partialorder %v259_v35, 0.0 }
 0x106   :  { %vm393_vm4 = vcmp.ge.f32.partialorder %v261_v38, 0.0  ;;  %v457_v42 = vmul.f32 0.22916667, %v261_v38  ;;  %v519_v44 = vsel %vm391_vm2, %v257_v32, %v455_v37 }
 0x107   :  { %vm394_vm5 = vcmp.ge.f32.partialorder %v263_v41, 0.0  ;;  %v458_v43 = vmul.f32 0.22916667, %v263_v41  ;;  %v520_v47 = vsel %vm392_vm3, %v259_v35, %v456_v40 }
 0x108   :  { %v521_v45 = vsel %vm393_vm4, %v261_v38, %v457_v42 }
 0x109   :  { %v266_v46 = vpop.f32.mrb[20].mxu0  ;;  %v522_v48 = vsel %vm394_vm5, %v263_v41, %v458_v43  ;;  %v575_v49 = vpack.c.bf16 %v521_v45, %v519_v44 }
 0x10a   :  { %v267_v50 = vadd.f32 %v266_v46, %v2660_v2  ;;  %v268_v51 = vpop.f32.mrb[21].mxu0  ;;  %v576_v52 = vpack.c.bf16 %v522_v48, %v520_v47 }
 0x10b   :  { %v269_v53 = vadd.f32 %v268_v51, %v2662_v17  ;;  %v270_v54 = vpop.f32.mrb[22].mxu0 }
 0x10c   :  { %v459_v55 = vmul.f32 0.22916667, %v267_v50  ;;  %v271_v56 = vadd.f32 %v270_v54, %v2660_v2  ;;  %v272_v57 = vpop.f32.mrb[23].mxu0  ;;  %798 = vmatprep.mubr.bf16.mxu1 %v576_v52  ;;  %vm395_vm6 = vcmp.ge.f32.partialorder %v267_v50, 0.0 }
 0x10d   :  { %v460_v58 = vmul.f32 0.22916667, %v269_v53  ;;  %v273_v59 = vadd.f32 %v272_v57, %v2662_v17  ;;  %799 = vmatmul.mubr.bf16.gmra.mrb[16].mxu1 %v575_v49  ;;  %vm396_vm7 = vcmp.ge.f32.partialorder %v269_v53, 0.0 }
 0x10e   :  { %vm397_vm8 = vcmp.ge.f32.partialorder %v271_v56, 0.0  ;;  %v461_v60 = vmul.f32 0.22916667, %v271_v56  ;;  %v523_v62 = vsel %vm395_vm6, %v267_v50, %v459_v55 }
 0x10f   :  { %vm398_vm9 = vcmp.ge.f32.partialorder %v273_v59, 0.0  ;;  %v462_v61 = vmul.f32 0.22916667, %v273_v59  ;;  %v524_v1 = vsel %vm396_vm7, %v269_v53, %v460_v58 }
 0x110   :  { %v525_v63 = vsel %vm397_vm8, %v271_v56, %v461_v60 }
 0x111   :  { %v276_v0 = vpop.f32.mrb[24].mxu0  ;;  %v526_v3 = vsel %vm398_vm9, %v273_v59, %v462_v61  ;;  %v577_v4 = vpack.c.bf16 %v525_v63, %v523_v62 }
 0x112   :  { %v277_v5 = vadd.f32 %v276_v0, %v2660_v2  ;;  %v278_v6 = vpop.f32.mrb[25].mxu0  ;;  %v578_v7 = vpack.c.bf16 %v526_v3, %v524_v1 }
 0x113   :  { %v279_v8 = vadd.f32 %v278_v6, %v2662_v17  ;;  %v280_v9 = vpop.f32.mrb[26].mxu0 }
 0x114   :  { %v463_v10 = vmul.f32 0.22916667, %v277_v5  ;;  %v281_v11 = vadd.f32 %v280_v9, %v2660_v2  ;;  %v282_v12 = vpop.f32.mrb[27].mxu0  ;;  %806 = vmatprep.mubr.bf16.mxu1 %v578_v7  ;;  %vm399_vm10 = vcmp.ge.f32.partialorder %v277_v5, 0.0 }
 0x115   :  { %v464_v13 = vmul.f32 0.22916667, %v279_v8  ;;  %v283_v14 = vadd.f32 %v282_v12, %v2662_v17  ;;  %807 = vmatmul.mubr.bf16.gmra.mrb[20].mxu1 %v577_v4  ;;  %vm400_vm11 = vcmp.ge.f32.partialorder %v279_v8, 0.0 }
 0x116   :  { %vm401_vm12 = vcmp.ge.f32.partialorder %v281_v11, 0.0  ;;  %v465_v15 = vmul.f32 0.22916667, %v281_v11  ;;  %v527_v18 = vsel %vm399_vm10, %v277_v5, %v463_v10 }
 0x117   :  { %vm402_vm13 = vcmp.ge.f32.partialorder %v283_v14, 0.0  ;;  %v466_v16 = vmul.f32 0.22916667, %v283_v14  ;;  %v528_v21 = vsel %vm400_vm11, %v279_v8, %v464_v13 }
 0x118   :  { %v529_v19 = vsel %vm401_vm12, %v281_v11, %v465_v15 }
 0x119   :  { %v286_v20 = vpop.f32.mrb[28].mxu0  ;;  %v530_v22 = vsel %vm402_vm13, %v283_v14, %v466_v16  ;;  %v579_v23 = vpack.c.bf16 %v529_v19, %v527_v18 }
 0x11a   :  { %v287_v24 = vadd.f32 %v286_v20, %v2660_v2  ;;  %v288_v25 = vpop.f32.mrb[29].mxu0  ;;  %v580_v26 = vpack.c.bf16 %v530_v22, %v528_v21 }
 0x11b   :  { %v289_v27 = vadd.f32 %v288_v25, %v2662_v17  ;;  %v290_v28 = vpop.f32.mrb[30].mxu0 }
 0x11c   :  { %v467_v29 = vmul.f32 0.22916667, %v287_v24  ;;  %v291_v30 = vadd.f32 %v290_v28, %v2660_v2  ;;  %v292_v31 = vpop.f32.mrb[31].mxu0  ;;  %814 = vmatprep.mubr.bf16.mxu1 %v580_v26  ;;  %vm403_vm14 = vcmp.ge.f32.partialorder %v287_v24, 0.0 }
 0x11d   :  { %v468_v32 = vmul.f32 0.22916667, %v289_v27  ;;  %v293_v33 = vadd.f32 %v292_v31, %v2662_v17  ;;  %815 = vmatmul.mubr.bf16.gmra.mrb[24].mxu1 %v579_v23  ;;  %vm404_vm15 = vcmp.ge.f32.partialorder %v289_v27, 0.0 }
 0x11e   :  { %vm405_vm0 = vcmp.ge.f32.partialorder %v291_v30, 0.0  ;;  %v469_v34 = vmul.f32 0.22916667, %v291_v30  ;;  %v531_v36 = vsel %vm403_vm14, %v287_v24, %v467_v29 }
 0x11f   :  { %vm406_vm1 = vcmp.ge.f32.partialorder %v293_v33, 0.0  ;;  %v470_v35 = vmul.f32 0.22916667, %v293_v33  ;;  %v532_v39 = vsel %vm404_vm15, %v289_v27, %v468_v32 }
 0x120   :  { %v533_v37 = vsel %vm405_vm0, %v291_v30, %v469_v34 }
 0x121   :  { %v296_v38 = vpop.f32.mrb[32].mxu0  ;;  %v534_v40 = vsel %vm406_vm1, %v293_v33, %v470_v35  ;;  %v581_v41 = vpack.c.bf16 %v533_v37, %v531_v36 }
 0x122   :  { %v297_v42 = vadd.f32 %v296_v38, %v2660_v2  ;;  %v298_v43 = vpop.f32.mrb[33].mxu0  ;;  %v582_v44 = vpack.c.bf16 %v534_v40, %v532_v39 }
 0x123   :  { %v299_v45 = vadd.f32 %v298_v43, %v2662_v17  ;;  %v300_v46 = vpop.f32.mrb[34].mxu0 }
 0x124   :  { %v471_v47 = vmul.f32 0.22916667, %v297_v42  ;;  %v301_v48 = vadd.f32 %v300_v46, %v2660_v2  ;;  %v302_v49 = vpop.f32.mrb[35].mxu0  ;;  %822 = vmatprep.mubr.bf16.mxu1 %v582_v44  ;;  %vm407_vm2 = vcmp.ge.f32.partialorder %v297_v42, 0.0 }
 0x125   :  { %v472_v50 = vmul.f32 0.22916667, %v299_v45  ;;  %v303_v51 = vadd.f32 %v302_v49, %v2662_v17  ;;  %823 = vmatmul.mubr.bf16.gmra.mrb[28].mxu1 %v581_v41  ;;  %vm408_vm3 = vcmp.ge.f32.partialorder %v299_v45, 0.0 }
 0x126   :  { %vm409_vm4 = vcmp.ge.f32.partialorder %v301_v48, 0.0  ;;  %v473_v52 = vmul.f32 0.22916667, %v301_v48  ;;  %v535_v54 = vsel %vm407_vm2, %v297_v42, %v471_v47 }
 0x127   :  { %vm410_vm5 = vcmp.ge.f32.partialorder %v303_v51, 0.0  ;;  %v474_v53 = vmul.f32 0.22916667, %v303_v51  ;;  %v536_v57 = vsel %vm408_vm3, %v299_v45, %v472_v50 }
 0x128   :  { %v537_v55 = vsel %vm409_vm4, %v301_v48, %v473_v52 }
 0x129   :  { %v306_v56 = vpop.f32.mrb[36].mxu0  ;;  %v538_v58 = vsel %vm410_vm5, %v303_v51, %v474_v53  ;;  %v583_v59 = vpack.c.bf16 %v537_v55, %v535_v54 }
 0x12a   :  { %v307_v60 = vadd.f32 %v306_v56, %v2660_v2  ;;  %v308_v61 = vpop.f32.mrb[37].mxu0  ;;  %v584_v62 = vpack.c.bf16 %v538_v58, %v536_v57  ;;  %v2311_v57 = vld [vmem:[%s2904_s5 + $0x20] sm:$0xff]  }
 0x12b   :  { %v309_v63 = vadd.f32 %v308_v61, %v2662_v17  ;;  %v310_v0 = vpop.f32.mrb[38].mxu0  ;;  %2175 = vmatprep.subr.bf16.mxu0 %v2311_v57 }
 0x12c   :  { %v475_v1 = vmul.f32 0.22916667, %v307_v60  ;;  %v311_v3 = vadd.f32 %v310_v0, %v2660_v2  ;;  %v312_v4 = vpop.f32.mrb[39].mxu0  ;;  %830 = vmatprep.mubr.bf16.mxu1 %v584_v62  ;;  %vm411_vm6 = vcmp.ge.f32.partialorder %v307_v60, 0.0  ;;  %2176 = vmatpush3.bf16.msra.mxu0 %v2311_v57 }
 0x12d   :  { %v476_v5 = vmul.f32 0.22916667, %v309_v63  ;;  %v313_v6 = vadd.f32 %v312_v4, %v2662_v17  ;;  %831 = vmatmul.mubr.bf16.gmra.mrb[32].mxu1 %v583_v59  ;;  %vm412_vm7 = vcmp.ge.f32.partialorder %v309_v63, 0.0 }
 0x12e   :  { %vm413_vm8 = vcmp.ge.f32.partialorder %v311_v3, 0.0  ;;  %v477_v7 = vmul.f32 0.22916667, %v311_v3  ;;  %v539_v9 = vsel %vm411_vm6, %v307_v60, %v475_v1  ;;  %v2312_v1 = vld [vmem:[%s2904_s5 + $0x28] sm:$0xff]  }
 0x12f   :  { %vm414_vm9 = vcmp.ge.f32.partialorder %v313_v6, 0.0  ;;  %v478_v8 = vmul.f32 0.22916667, %v313_v6  ;;  %v540_v12 = vsel %vm412_vm7, %v309_v63, %v476_v5  ;;  %2177 = vmatprep.subr.bf16.mxu0 %v2312_v1 }
 0x130   :  { %v541_v10 = vsel %vm413_vm8, %v311_v3, %v477_v7  ;;  %2178 = vmatpush3.bf16.msra.mxu0 %v2312_v1 }
 0x131   :  { %v316_v11 = vpop.f32.mrb[40].mxu0  ;;  %v542_v13 = vsel %vm414_vm9, %v313_v6, %v478_v8  ;;  %v585_v14 = vpack.c.bf16 %v541_v10, %v539_v9 }
 0x132   :  { %v317_v15 = vadd.f32 %v316_v11, %v2660_v2  ;;  %v318_v16 = vpop.f32.mrb[41].mxu0  ;;  %v586_v18 = vpack.c.bf16 %v542_v13, %v540_v12 }
 0x133   :  { %v319_v19 = vadd.f32 %v318_v16, %v2662_v17  ;;  %v320_v20 = vpop.f32.mrb[42].mxu0 }
 0x134   :  { %v479_v21 = vmul.f32 0.22916667, %v317_v15  ;;  %v321_v22 = vadd.f32 %v320_v20, %v2660_v2  ;;  %v322_v23 = vpop.f32.mrb[43].mxu0  ;;  %838 = vmatprep.mubr.bf16.mxu1 %v586_v18  ;;  %vm415_vm10 = vcmp.ge.f32.partialorder %v317_v15, 0.0 }
 0x135   :  { %v480_v24 = vmul.f32 0.22916667, %v319_v19  ;;  %v323_v25 = vadd.f32 %v322_v23, %v2662_v17  ;;  %839 = vmatmul.mubr.bf16.gmra.mrb[36].mxu1 %v585_v14  ;;  %vm416_vm11 = vcmp.ge.f32.partialorder %v319_v19, 0.0  ;;  %v2313_v14 = vld [vmem:[%s2904_s5 + $0x30] sm:$0xff]   ;;  %v2314_v23 = vld [vmem:[%s2904_s5 + $0x38] sm:$0xff]  }
 0x136   :  { %vm417_vm12 = vcmp.ge.f32.partialorder %v321_v22, 0.0  ;;  %v481_v26 = vmul.f32 0.22916667, %v321_v22  ;;  %v543_v28 = vsel %vm415_vm10, %v317_v15, %v479_v21  ;;  %2179 = vmatprep.subr.bf16.mxu0 %v2313_v14 }
 0x137   :  { %vm418_vm13 = vcmp.ge.f32.partialorder %v323_v25, 0.0  ;;  %v482_v27 = vmul.f32 0.22916667, %v323_v25  ;;  %v544_v31 = vsel %vm416_vm11, %v319_v19, %v480_v24  ;;  %2180 = vmatpush3.bf16.msra.mxu0 %v2313_v14 }
 0x138   :  { %v545_v29 = vsel %vm417_vm12, %v321_v22, %v481_v26  ;;  %2181 = vmatprep.subr.bf16.mxu0 %v2314_v23 }
 0x139   :  { %v326_v30 = vpop.f32.mrb[44].mxu0  ;;  %v546_v32 = vsel %vm418_vm13, %v323_v25, %v482_v27  ;;  %v587_v33 = vpack.c.bf16 %v545_v29, %v543_v28 }
 0x13a   :  { %v327_v34 = vadd.f32 %v326_v30, %v2660_v2  ;;  %v328_v35 = vpop.f32.mrb[45].mxu0  ;;  %v588_v36 = vpack.c.bf16 %v546_v32, %v544_v31 }
 0x13b   :  { %v329_v37 = vadd.f32 %v328_v35, %v2662_v17  ;;  %v330_v38 = vpop.f32.mrb[46].mxu0  ;;  %2182 = vmatpush3.bf16.msra.mxu0 %v2314_v23  ;;  %v2317_v23 = vld [vmem:[%s2906_s7 + $0x10] sm:$0xff]  }
 0x13c   :  { %v483_v39 = vmul.f32 0.22916667, %v327_v34  ;;  %v331_v40 = vadd.f32 %v330_v38, %v2660_v2  ;;  %v332_v41 = vpop.f32.mrb[47].mxu0  ;;  %846 = vmatprep.mubr.bf16.mxu1 %v588_v36  ;;  %vm419_vm14 = vcmp.ge.f32.partialorder %v327_v34, 0.0 }
 0x13d   :  { %v484_v42 = vmul.f32 0.22916667, %v329_v37  ;;  %v333_v43 = vadd.f32 %v332_v41, %v2662_v17  ;;  %847 = vmatmul.mubr.bf16.gmra.mrb[40].mxu1 %v587_v33  ;;  %vm420_vm15 = vcmp.ge.f32.partialorder %v329_v37, 0.0 }
 0x13e   :  { %vm421_vm0 = vcmp.ge.f32.partialorder %v331_v40, 0.0  ;;  %v485_v44 = vmul.f32 0.22916667, %v331_v40  ;;  %v547_v46 = vsel %vm419_vm14, %v327_v34, %v483_v39 }
 0x13f   :  { %vm422_vm1 = vcmp.ge.f32.partialorder %v333_v43, 0.0  ;;  %v486_v45 = vmul.f32 0.22916667, %v333_v43  ;;  %v548_v49 = vsel %vm420_vm15, %v329_v37, %v484_v42 }
 0x140   :  { %v549_v47 = vsel %vm421_vm0, %v331_v40, %v485_v44 }
 0x141   :  { %v336_v48 = vpop.f32.mrb[48].mxu0  ;;  %v550_v50 = vsel %vm422_vm1, %v333_v43, %v486_v45  ;;  %v589_v51 = vpack.c.bf16 %v549_v47, %v547_v46 }
 0x142   :  { %v337_v52 = vadd.f32 %v336_v48, %v2660_v2  ;;  %v338_v53 = vpop.f32.mrb[49].mxu0  ;;  %v590_v54 = vpack.c.bf16 %v550_v50, %v548_v49 }
 0x143   :  { %v339_v55 = vadd.f32 %v338_v53, %v2662_v17  ;;  %v340_v56 = vpop.f32.mrb[50].mxu0 }
 0x144   :  { %v487_v58 = vmul.f32 0.22916667, %v337_v52  ;;  %v341_v59 = vadd.f32 %v340_v56, %v2660_v2  ;;  %v342_v60 = vpop.f32.mrb[51].mxu0  ;;  %854 = vmatprep.mubr.bf16.mxu1 %v590_v54  ;;  %vm423_vm2 = vcmp.ge.f32.partialorder %v337_v52, 0.0 }
 0x145   :  { %v488_v61 = vmul.f32 0.22916667, %v339_v55  ;;  %v343_v62 = vadd.f32 %v342_v60, %v2662_v17  ;;  %855 = vmatmul.mubr.bf16.gmra.mrb[44].mxu1 %v589_v51  ;;  %vm424_vm3 = vcmp.ge.f32.partialorder %v339_v55, 0.0 }
 0x146   :  { %vm425_vm4 = vcmp.ge.f32.partialorder %v341_v59, 0.0  ;;  %v489_v63 = vmul.f32 0.22916667, %v341_v59  ;;  %v551_v3 = vsel %vm423_vm2, %v337_v52, %v487_v58 }
 0x147   :  { %vm426_vm5 = vcmp.ge.f32.partialorder %v343_v62, 0.0  ;;  %v490_v0 = vmul.f32 0.22916667, %v343_v62  ;;  %v552_v6 = vsel %vm424_vm3, %v339_v55, %v488_v61 }
 0x148   :  { %v553_v4 = vsel %vm425_vm4, %v341_v59, %v489_v63 }
 0x149   :  { %v346_v5 = vpop.f32.mrb[52].mxu0  ;;  %v554_v7 = vsel %vm426_vm5, %v343_v62, %v490_v0  ;;  %v591_v8 = vpack.c.bf16 %v553_v4, %v551_v3  ;;  %v2755_v3 = vld [vmem:[%s2903_s4] ss:$0 sm:$0xff] }
 0x14a   :  { %v347_v9 = vadd.f32 %v346_v5, %v2660_v2  ;;  %v348_v10 = vpop.f32.mrb[53].mxu0  ;;  %v592_v11 = vpack.c.bf16 %v554_v7, %v552_v6 }
 0x14b   :  { %v349_v12 = vadd.f32 %v348_v10, %v2662_v17  ;;  %v350_v13 = vpop.f32.mrb[54].mxu0 }
 0x14c   :  { %v491_v15 = vmul.f32 0.22916667, %v347_v9  ;;  %v351_v16 = vadd.f32 %v350_v13, %v2660_v2  ;;  %v352_v18 = vpop.f32.mrb[55].mxu0  ;;  %862 = vmatprep.mubr.bf16.mxu1 %v592_v11  ;;  %vm427_vm6 = vcmp.ge.f32.partialorder %v347_v9, 0.0 }
 0x14d   :  { %v492_v19 = vmul.f32 0.22916667, %v349_v12  ;;  %v353_v20 = vadd.f32 %v352_v18, %v2662_v17  ;;  %863 = vmatmul.mubr.bf16.gmra.mrb[48].mxu1 %v591_v8  ;;  %vm428_vm7 = vcmp.ge.f32.partialorder %v349_v12, 0.0 }
 0x14e   :  { %vm429_vm8 = vcmp.ge.f32.partialorder %v351_v16, 0.0  ;;  %v493_v21 = vmul.f32 0.22916667, %v351_v16  ;;  %v555_v24 = vsel %vm427_vm6, %v347_v9, %v491_v15  ;;  %v2315_v9 = vld [vmem:[%s2906_s7] sm:$0xff]  }
 0x14f   :  { %vm430_vm9 = vcmp.ge.f32.partialorder %v353_v20, 0.0  ;;  %v494_v22 = vmul.f32 0.22916667, %v353_v20  ;;  %v556_v27 = vsel %vm428_vm7, %v349_v12, %v492_v19  ;;  %2263 = vmatprep.subr.bf16.mxu1 %v2315_v9  ;;  %v2316_v12 = vld [vmem:[%s2906_s7 + $0x8] sm:$0xff]   ;;  %2215 = vmatprep.subr.bf16.mxu0 %v2315_v9 }
 0x150   :  { %v557_v25 = vsel %vm429_vm8, %v351_v16, %v493_v21  ;;  %2271 = vmatpush3.bf16.msra.mxu1 %v2315_v9 }
 0x151   :  { %v356_v26 = vpop.f32.mrb[56].mxu0  ;;  %v558_v28 = vsel %vm430_vm9, %v353_v20, %v494_v22  ;;  %v593_v29 = vpack.c.bf16 %v557_v25, %v555_v24  ;;  %2264 = vmatprep.subr.bf16.mxu1 %v2316_v12 }
 0x152   :  { %v357_v30 = vadd.f32 %v356_v26, %v2660_v2  ;;  %v358_v31 = vpop.f32.mrb[57].mxu0  ;;  %v594_v32 = vpack.c.bf16 %v558_v28, %v556_v27  ;;  %v2318_v28 = vld [vmem:[%s2906_s7 + $0x18] sm:$0xff]  }
 0x153   :  { %v359_v33 = vadd.f32 %v358_v31, %v2662_v17  ;;  %v360_v34 = vpop.f32.mrb[58].mxu0 }
 0x154   :  { %v495_v35 = vmul.f32 0.22916667, %v357_v30  ;;  %v361_v36 = vadd.f32 %v360_v34, %v2660_v2  ;;  %v362_v37 = vpop.f32.mrb[59].mxu0  ;;  %870 = vmatprep.mubr.bf16.mxu1 %v594_v32  ;;  %vm431_vm10 = vcmp.ge.f32.partialorder %v357_v30, 0.0  ;;  %2272 = vmatpush3.bf16.msra.mxu1 %v2316_v12 }
 0x155   :  { %v496_v38 = vmul.f32 0.22916667, %v359_v33  ;;  %v363_v39 = vadd.f32 %v362_v37, %v2662_v17  ;;  %871 = vmatmul.mubr.bf16.gmra.mrb[52].mxu1 %v593_v29  ;;  %vm432_vm11 = vcmp.ge.f32.partialorder %v359_v33, 0.0  ;;  %2265 = vmatprep.subr.bf16.mxu1 %v2317_v23 }
 0x156   :  { %vm433_vm12 = vcmp.ge.f32.partialorder %v361_v36, 0.0  ;;  %v497_v40 = vmul.f32 0.22916667, %v361_v36  ;;  %v559_v42 = vsel %vm431_vm10, %v357_v30, %v495_v35 }
 0x157   :  { %vm434_vm13 = vcmp.ge.f32.partialorder %v363_v39, 0.0  ;;  %v498_v41 = vmul.f32 0.22916667, %v363_v39  ;;  %v560_v45 = vsel %vm432_vm11, %v359_v33, %v496_v38  ;;  %v2319_v38 = vld [vmem:[%s2906_s7 + $0x20] sm:$0xff]  }
 0x158   :  { %v561_v43 = vsel %vm433_vm12, %v361_v36, %v497_v40  ;;  %2273 = vmatpush3.bf16.msra.mxu1 %v2317_v23 }
 0x159   :  { %v366_v44 = vpop.f32.mrb[60].mxu0  ;;  %v562_v46 = vsel %vm434_vm13, %v363_v39, %v498_v41  ;;  %v595_v47 = vpack.c.bf16 %v561_v43, %v559_v42  ;;  %2266 = vmatprep.subr.bf16.mxu1 %v2318_v28 }
 0x15a   :  { %v367_v48 = vadd.f32 %v366_v44, %v2660_v2  ;;  %v368_v49 = vpop.f32.mrb[61].mxu0  ;;  %v596_v50 = vpack.c.bf16 %v562_v46, %v560_v45 }
 0x15b   :  { %v369_v51 = vadd.f32 %v368_v49, %v2662_v17  ;;  %v370_v52 = vpop.f32.mrb[62].mxu0 }
 0x15c   :  { %v499_v53 = vmul.f32 0.22916667, %v367_v48  ;;  %v371_v54 = vadd.f32 %v370_v52, %v2660_v2  ;;  %v372_v55 = vpop.f32.mrb[63].mxu0  ;;  %878 = vmatprep.mubr.bf16.mxu1 %v596_v50  ;;  %vm435_vm14 = vcmp.ge.f32.partialorder %v367_v48, 0.0  ;;  %2274 = vmatpush3.bf16.msra.mxu1 %v2318_v28 }
 0x15d   :  { %v500_v56 = vmul.f32 0.22916667, %v369_v51  ;;  %v373_v57 = vadd.f32 %v372_v55, %v2662_v17  ;;  %879 = vmatmul.mubr.bf16.gmra.mrb[56].mxu1 %v595_v47  ;;  %vm436_vm15 = vcmp.ge.f32.partialorder %v369_v51, 0.0  ;;  %2267 = vmatprep.subr.bf16.mxu1 %v2319_v38 }
 0x15e   :  { %vm437_vm0 = vcmp.ge.f32.partialorder %v371_v54, 0.0  ;;  %v501_v58 = vmul.f32 0.22916667, %v371_v54  ;;  %v563_v60 = vsel %vm435_vm14, %v367_v48, %v499_v53 }
 0x15f   :  { %vm438_vm1 = vcmp.ge.f32.partialorder %v373_v57, 0.0  ;;  %v502_v59 = vmul.f32 0.22916667, %v373_v57  ;;  %v564_v62 = vsel %vm436_vm15, %v369_v51, %v500_v56 }
 0x160   :  { %v565_v61 = vsel %vm437_vm0, %v371_v54, %v501_v58  ;;  %2275 = vmatpush3.bf16.msra.mxu1 %v2319_v38 }
 0x161   :  { %v566_v63 = vsel %vm438_vm1, %v373_v57, %v502_v59  ;;  %v597_v0 = vpack.c.bf16 %v565_v61, %v563_v60 }
 0x162   :  { %v598_v1 = vpack.c.bf16 %v566_v63, %v564_v62 }
 0x164   :  { %886 = vmatprep.mubr.bf16.mxu1 %v598_v1 }
 0x165   :  { %887 = vmatmul.mubr.bf16.gmra.mrb[60].mxu1 %v597_v0 }
 0x1c0   :  { %v2023_v2 = vpop.f32.mrb[0].mxu1 }
 0x1c1   :  { %v2024_v17 = vpop.f32.mrb[1].mxu1 }
 0x1c2   :  { %v2025_v4 = vadd.f32 %v2024_v17, %v2023_v2  ;;  %v2026_v5 = vpop.f32.mrb[2].mxu1 }
 0x1c3   :  { %v2027_v6 = vpop.f32.mrb[3].mxu1 }
 0x1c4   :  { %v769_v7 = vadd.f32 %v2025_v4, %v2755_v3  ;;  %v2028_v8 = vadd.f32 %v2027_v6, %v2026_v5 }
 0x1c6   :  { %v927_v10 = vmul.f32 0.22916667, %v769_v7  ;;  %v772_v11 = vadd.f32 %v2028_v8, %v2755_v3  ;;  %vm895_vm2 = vcmp.ge.f32.partialorder %v769_v7, 0.0 }
 0x1c8   :  { %vm896_vm3 = vcmp.ge.f32.partialorder %v772_v11, 0.0  ;;  %v928_v13 = vmul.f32 0.22916667, %v772_v11  ;;  %v2029_v14 = vpop.f32.mrb[4].mxu1  ;;  %v959_v19 = vsel %vm895_vm2, %v769_v7, %v927_v10 }
 0x1c9   :  { %v2030_v15 = vpop.f32.mrb[5].mxu1 }
 0x1ca   :  { %v2031_v16 = vadd.f32 %v2030_v15, %v2029_v14  ;;  %v2032_v18 = vpop.f32.mrb[6].mxu1  ;;  %v960_v20 = vsel %vm896_vm3, %v772_v11, %v928_v13 }
 0x1cb   :  { %v2033_v21 = vpop.f32.mrb[7].mxu1  ;;  %v991_v22 = vpack.c.bf16 %v960_v20, %v959_v19 }
 0x1cc   :  { %v777_v24 = vadd.f32 %v2031_v16, %v2755_v3  ;;  %v2034_v25 = vadd.f32 %v2033_v21, %v2032_v18 }
 0x1cd   :  { %2183 = vmatprep.mubr.bf16.mxu0 %v991_v22 }
 0x1ce   :  { %v929_v26 = vmul.f32 0.22916667, %v777_v24  ;;  %v780_v27 = vadd.f32 %v2034_v25, %v2755_v3  ;;  %vm897_vm4 = vcmp.ge.f32.partialorder %v777_v24, 0.0 }
 0x1d0   :  { %vm898_vm5 = vcmp.ge.f32.partialorder %v780_v27, 0.0  ;;  %v930_v29 = vmul.f32 0.22916667, %v780_v27  ;;  %v2035_v30 = vpop.f32.mrb[8].mxu1  ;;  %v961_v32 = vsel %vm897_vm4, %v777_v24, %v929_v26 }
 0x1d1   :  { %v2036_v31 = vpop.f32.mrb[9].mxu1 }
 0x1d2   :  { %v962_v33 = vsel %vm898_vm5, %v780_v27, %v930_v29  ;;  %v2037_v34 = vadd.f32 %v2036_v31, %v2035_v30  ;;  %v2038_v35 = vpop.f32.mrb[10].mxu1 }
 0x1d3   :  { %v992_v36 = vpack.c.bf16 %v962_v33, %v961_v32  ;;  %v2039_v37 = vpop.f32.mrb[11].mxu1 }
 0x1d4   :  { %v785_v39 = vadd.f32 %v2037_v34, %v2755_v3  ;;  %v2040_v40 = vadd.f32 %v2039_v37, %v2038_v35 }
 0x1d5   :  { %2184 = vmatmul.mubr.bf16.vlgmr.msra.gmra.mrb[64].mxu0 %v992_v36 }
 0x1d6   :  { %v931_v41 = vmul.f32 0.22916667, %v785_v39  ;;  %v788_v42 = vadd.f32 %v2040_v40, %v2755_v3  ;;  %2216 = vmatpush3.bf16.msra.mxu0 %v2315_v9  ;;  %vm899_vm6 = vcmp.ge.f32.partialorder %v785_v39, 0.0 }
 0x1d7   :  { %2217 = vmatprep.subr.bf16.mxu0 %v2316_v12 }
 0x1d8   :  { %vm900_vm7 = vcmp.ge.f32.partialorder %v788_v42, 0.0  ;;  %v932_v43 = vmul.f32 0.22916667, %v788_v42  ;;  %v2041_v44 = vpop.f32.mrb[12].mxu1  ;;  %v963_v48 = vsel %vm899_vm6, %v785_v39, %v931_v41 }
 0x1d9   :  { %v2042_v45 = vpop.f32.mrb[13].mxu1 }
 0x1da   :  { %v2043_v46 = vadd.f32 %v2042_v45, %v2041_v44  ;;  %v2044_v47 = vpop.f32.mrb[14].mxu1  ;;  %v964_v49 = vsel %vm900_vm7, %v788_v42, %v932_v43  ;;  %2218 = vmatpush3.bf16.msra.mxu0 %v2316_v12 }
 0x1db   :  { %v2045_v50 = vpop.f32.mrb[15].mxu1  ;;  %v993_v51 = vpack.c.bf16 %v964_v49, %v963_v48  ;;  %2219 = vmatprep.subr.bf16.mxu0 %v2317_v23 }
 0x1dc   :  { %v793_v52 = vadd.f32 %v2043_v46, %v2755_v3  ;;  %v2046_v53 = vadd.f32 %v2045_v50, %v2044_v47 }
 0x1dd   :  { %2187 = vmatprep.mubr.bf16.mxu0 %v993_v51 }
 0x1de   :  { %v933_v54 = vmul.f32 0.22916667, %v793_v52  ;;  %v796_v55 = vadd.f32 %v2046_v53, %v2755_v3  ;;  %2220 = vmatpush3.bf16.msra.mxu0 %v2317_v23  ;;  %vm901_vm8 = vcmp.ge.f32.partialorder %v793_v52, 0.0 }
 0x1df   :  { %2221 = vmatprep.subr.bf16.mxu0 %v2318_v28 }
 0x1e0   :  { %vm902_vm9 = vcmp.ge.f32.partialorder %v796_v55, 0.0  ;;  %v934_v56 = vmul.f32 0.22916667, %v796_v55  ;;  %v2047_v57 = vpop.f32.mrb[16].mxu1  ;;  %v965_v61 = vsel %vm901_vm8, %v793_v52, %v933_v54 }
 0x1e1   :  { %v2048_v58 = vpop.f32.mrb[17].mxu1 }
 0x1e2   :  { %v2049_v59 = vadd.f32 %v2048_v58, %v2047_v57  ;;  %v2050_v60 = vpop.f32.mrb[18].mxu1  ;;  %v966_v62 = vsel %vm902_vm9, %v796_v55, %v934_v56  ;;  %2222 = vmatpush3.bf16.msra.mxu0 %v2318_v28 }
 0x1e3   :  { %v2051_v63 = vpop.f32.mrb[19].mxu1  ;;  %v994_v0 = vpack.c.bf16 %v966_v62, %v965_v61  ;;  %2223 = vmatprep.subr.bf16.mxu0 %v2319_v38 }
 0x1e4   :  { %v801_v1 = vadd.f32 %v2049_v59, %v2755_v3  ;;  %v2052_v2 = vadd.f32 %v2051_v63, %v2050_v60 }
 0x1e5   :  { %2188 = vmatmul.mubr.bf16.gmra.mrb[68].mxu0 %v994_v0 }
 0x1e6   :  { %v935_v17 = vmul.f32 0.22916667, %v801_v1  ;;  %v804_v4 = vadd.f32 %v2052_v2, %v2755_v3  ;;  %2224 = vmatpush3.bf16.msra.mxu0 %v2319_v38  ;;  %vm903_vm10 = vcmp.ge.f32.partialorder %v801_v1, 0.0 }
 0x1e8   :  { %vm904_vm11 = vcmp.ge.f32.partialorder %v804_v4, 0.0  ;;  %v936_v5 = vmul.f32 0.22916667, %v804_v4  ;;  %v2053_v6 = vpop.f32.mrb[20].mxu1  ;;  %v967_v10 = vsel %vm903_vm10, %v801_v1, %v935_v17 }
 0x1e9   :  { %v2054_v7 = vpop.f32.mrb[21].mxu1 }
 0x1ea   :  { %v2055_v8 = vadd.f32 %v2054_v7, %v2053_v6  ;;  %v2056_v9 = vpop.f32.mrb[22].mxu1  ;;  %v968_v11 = vsel %vm904_vm11, %v804_v4, %v936_v5 }
 0x1eb   :  { %v2057_v12 = vpop.f32.mrb[23].mxu1  ;;  %v995_v13 = vpack.c.bf16 %v968_v11, %v967_v10 }
 0x1ec   :  { %v809_v14 = vadd.f32 %v2055_v8, %v2755_v3  ;;  %v2058_v15 = vadd.f32 %v2057_v12, %v2056_v9 }
 0x1ed   :  { %2191 = vmatprep.mubr.bf16.mxu0 %v995_v13 }
 0x1ee   :  { %v937_v16 = vmul.f32 0.22916667, %v809_v14  ;;  %v812_v18 = vadd.f32 %v2058_v15, %v2755_v3  ;;  %vm905_vm12 = vcmp.ge.f32.partialorder %v809_v14, 0.0 }
 0x1f0   :  { %vm906_vm13 = vcmp.ge.f32.partialorder %v812_v18, 0.0  ;;  %v938_v19 = vmul.f32 0.22916667, %v812_v18  ;;  %v2059_v20 = vpop.f32.mrb[24].mxu1  ;;  %v969_v24 = vsel %vm905_vm12, %v809_v14, %v937_v16 }
 0x1f1   :  { %v2060_v21 = vpop.f32.mrb[25].mxu1 }
 0x1f2   :  { %v2061_v22 = vadd.f32 %v2060_v21, %v2059_v20  ;;  %v2062_v23 = vpop.f32.mrb[26].mxu1  ;;  %v970_v25 = vsel %vm906_vm13, %v812_v18, %v938_v19 }
 0x1f3   :  { %v2063_v26 = vpop.f32.mrb[27].mxu1  ;;  %v996_v27 = vpack.c.bf16 %v970_v25, %v969_v24 }
 0x1f4   :  { %v817_v28 = vadd.f32 %v2061_v22, %v2755_v3  ;;  %v2064_v29 = vadd.f32 %v2063_v26, %v2062_v23 }
 0x1f5   :  { %2192 = vmatmul.mubr.bf16.gmra.mrb[72].mxu0 %v996_v27 }
 0x1f6   :  { %v939_v30 = vmul.f32 0.22916667, %v817_v28  ;;  %v820_v31 = vadd.f32 %v2064_v29, %v2755_v3  ;;  %vm907_vm14 = vcmp.ge.f32.partialorder %v817_v28, 0.0 }
 0x1f8   :  { %vm908_vm15 = vcmp.ge.f32.partialorder %v820_v31, 0.0  ;;  %v940_v32 = vmul.f32 0.22916667, %v820_v31  ;;  %v2065_v33 = vpop.f32.mrb[28].mxu1  ;;  %v971_v37 = vsel %vm907_vm14, %v817_v28, %v939_v30 }
 0x1f9   :  { %v2066_v34 = vpop.f32.mrb[29].mxu1 }
 0x1fa   :  { %v2067_v35 = vadd.f32 %v2066_v34, %v2065_v33  ;;  %v2068_v36 = vpop.f32.mrb[30].mxu1  ;;  %v972_v38 = vsel %vm908_vm15, %v820_v31, %v940_v32 }
 0x1fb   :  { %v2069_v39 = vpop.f32.mrb[31].mxu1  ;;  %v997_v40 = vpack.c.bf16 %v972_v38, %v971_v37 }
 0x1fc   :  { %v825_v41 = vadd.f32 %v2067_v35, %v2755_v3  ;;  %v2070_v42 = vadd.f32 %v2069_v39, %v2068_v36 }
 0x1fd   :  { %2195 = vmatprep.mubr.bf16.mxu0 %v997_v40 }
 0x1fe   :  { %v941_v43 = vmul.f32 0.22916667, %v825_v41  ;;  %v828_v44 = vadd.f32 %v2070_v42, %v2755_v3  ;;  %vm909_vm0 = vcmp.ge.f32.partialorder %v825_v41, 0.0 }
 0x200   :  { %vm910_vm1 = vcmp.ge.f32.partialorder %v828_v44, 0.0  ;;  %v942_v45 = vmul.f32 0.22916667, %v828_v44  ;;  %v2071_v46 = vpop.f32.mrb[32].mxu1  ;;  %v973_v50 = vsel %vm909_vm0, %v825_v41, %v941_v43 }
 0x201   :  { %v2072_v47 = vpop.f32.mrb[33].mxu1 }
 0x202   :  { %v2073_v48 = vadd.f32 %v2072_v47, %v2071_v46  ;;  %v2074_v49 = vpop.f32.mrb[34].mxu1  ;;  %v974_v51 = vsel %vm910_vm1, %v828_v44, %v942_v45  ;;  %v2320_v47 = vld [vmem:[%s2906_s7 + $0x28] sm:$0xff]  }
 0x203   :  { %v2075_v52 = vpop.f32.mrb[35].mxu1  ;;  %v998_v53 = vpack.c.bf16 %v974_v51, %v973_v50  ;;  %2225 = vmatprep.subr.bf16.mxu0 %v2320_v47  ;;  %2268 = vmatprep.subr.bf16.mxu1 %v2320_v47 }
 0x204   :  { %v833_v54 = vadd.f32 %v2073_v48, %v2755_v3  ;;  %v2076_v55 = vadd.f32 %v2075_v52, %v2074_v49  ;;  %2226 = vmatpush3.bf16.msra.mxu0 %v2320_v47  ;;  %2276 = vmatpush3.bf16.msra.mxu1 %v2320_v47 }
 0x205   :  { %2196 = vmatmul.mubr.bf16.gmra.mrb[76].mxu0 %v998_v53 }
 0x206   :  { %v943_v56 = vmul.f32 0.22916667, %v833_v54  ;;  %v836_v57 = vadd.f32 %v2076_v55, %v2755_v3  ;;  %vm911_vm2 = vcmp.ge.f32.partialorder %v833_v54, 0.0  ;;  %v2321_v55 = vld [vmem:[%s2906_s7 + $0x30] sm:$0xff]  }
 0x207   :  { %2227 = vmatprep.subr.bf16.mxu0 %v2321_v55  ;;  %2269 = vmatprep.subr.bf16.mxu1 %v2321_v55 }
 0x208   :  { %vm912_vm3 = vcmp.ge.f32.partialorder %v836_v57, 0.0  ;;  %v944_v58 = vmul.f32 0.22916667, %v836_v57  ;;  %v2077_v59 = vpop.f32.mrb[36].mxu1  ;;  %v975_v63 = vsel %vm911_vm2, %v833_v54, %v943_v56  ;;  %2228 = vmatpush3.bf16.msra.mxu0 %v2321_v55  ;;  %2277 = vmatpush3.bf16.msra.mxu1 %v2321_v55 }
 0x209   :  { %v2078_v60 = vpop.f32.mrb[37].mxu1 }
 0x20a   :  { %v2079_v61 = vadd.f32 %v2078_v60, %v2077_v59  ;;  %v2080_v62 = vpop.f32.mrb[38].mxu1  ;;  %v976_v0 = vsel %vm912_vm3, %v836_v57, %v944_v58 }
 0x20b   :  { %v2081_v1 = vpop.f32.mrb[39].mxu1  ;;  %v999_v2 = vpack.c.bf16 %v976_v0, %v975_v63 }
 0x20c   :  { %v841_v17 = vadd.f32 %v2079_v61, %v2755_v3  ;;  %v2082_v4 = vadd.f32 %v2081_v1, %v2080_v62  ;;  %v2322_v62 = vld [vmem:[%s2906_s7 + $0x38] sm:$0xff]  }
 0x20d   :  { %2199 = vmatprep.mubr.bf16.mxu0 %v999_v2  ;;  %2229 = vmatprep.subr.bf16.mxu0 %v2322_v62 }
 0x20e   :  { %v945_v5 = vmul.f32 0.22916667, %v841_v17  ;;  %v844_v6 = vadd.f32 %v2082_v4, %v2755_v3  ;;  %vm913_vm4 = vcmp.ge.f32.partialorder %v841_v17, 0.0  ;;  %2270 = vmatprep.subr.bf16.mxu1 %v2322_v62  ;;  %2230 = vmatpush3.bf16.msra.mxu0 %v2322_v62 }
 0x20f   :  { %2278 = vmatpush3.bf16.msra.mxu1 %v2322_v62 }
 0x210   :  { %vm914_vm5 = vcmp.ge.f32.partialorder %v844_v6, 0.0  ;;  %v946_v7 = vmul.f32 0.22916667, %v844_v6  ;;  %v2083_v8 = vpop.f32.mrb[40].mxu1  ;;  %v977_v12 = vsel %vm913_vm4, %v841_v17, %v945_v5 }
 0x211   :  { %v2084_v9 = vpop.f32.mrb[41].mxu1 }
 0x212   :  { %v2085_v10 = vadd.f32 %v2084_v9, %v2083_v8  ;;  %v2086_v11 = vpop.f32.mrb[42].mxu1  ;;  %v978_v13 = vsel %vm914_vm5, %v844_v6, %v946_v7 }
 0x213   :  { %v2087_v14 = vpop.f32.mrb[43].mxu1  ;;  %v1000_v15 = vpack.c.bf16 %v978_v13, %v977_v12 }
 0x214   :  { %v849_v16 = vadd.f32 %v2085_v10, %v2755_v3  ;;  %v2088_v18 = vadd.f32 %v2087_v14, %v2086_v11 }
 0x215   :  { %2200 = vmatmul.mubr.bf16.gmra.mrb[80].mxu0 %v1000_v15 }
 0x216   :  { %v947_v19 = vmul.f32 0.22916667, %v849_v16  ;;  %v852_v20 = vadd.f32 %v2088_v18, %v2755_v3  ;;  %vm915_vm6 = vcmp.ge.f32.partialorder %v849_v16, 0.0 }
 0x218   :  { %vm916_vm7 = vcmp.ge.f32.partialorder %v852_v20, 0.0  ;;  %v948_v21 = vmul.f32 0.22916667, %v852_v20  ;;  %v2089_v22 = vpop.f32.mrb[44].mxu1  ;;  %v979_v26 = vsel %vm915_vm6, %v849_v16, %v947_v19 }
 0x219   :  { %v2090_v23 = vpop.f32.mrb[45].mxu1 }
 0x21a   :  { %v2091_v24 = vadd.f32 %v2090_v23, %v2089_v22  ;;  %v2092_v25 = vpop.f32.mrb[46].mxu1  ;;  %v980_v27 = vsel %vm916_vm7, %v852_v20, %v948_v21 }
 0x21b   :  { %v2093_v28 = vpop.f32.mrb[47].mxu1  ;;  %v1001_v29 = vpack.c.bf16 %v980_v27, %v979_v26 }
 0x21c   :  { %v857_v30 = vadd.f32 %v2091_v24, %v2755_v3  ;;  %v2094_v31 = vadd.f32 %v2093_v28, %v2092_v25 }
 0x21d   :  { %2203 = vmatprep.mubr.bf16.mxu0 %v1001_v29 }
 0x21e   :  { %v949_v32 = vmul.f32 0.22916667, %v857_v30  ;;  %v860_v33 = vadd.f32 %v2094_v31, %v2755_v3  ;;  %vm917_vm8 = vcmp.ge.f32.partialorder %v857_v30, 0.0 }
 0x220   :  { %vm918_vm9 = vcmp.ge.f32.partialorder %v860_v33, 0.0  ;;  %v950_v34 = vmul.f32 0.22916667, %v860_v33  ;;  %v2095_v35 = vpop.f32.mrb[48].mxu1  ;;  %v981_v39 = vsel %vm917_vm8, %v857_v30, %v949_v32  ;;  %v2816_v30 = vld [vmem:[%s2905_s6] ss:$0 sm:$0xff] }
 0x221   :  { %v2096_v36 = vpop.f32.mrb[49].mxu1 }
 0x222   :  { %v2097_v37 = vadd.f32 %v2096_v36, %v2095_v35  ;;  %v2098_v38 = vpop.f32.mrb[50].mxu1  ;;  %v982_v40 = vsel %vm918_vm9, %v860_v33, %v950_v34 }
 0x223   :  { %v2099_v41 = vpop.f32.mrb[51].mxu1  ;;  %v1002_v42 = vpack.c.bf16 %v982_v40, %v981_v39 }
 0x224   :  { %v865_v43 = vadd.f32 %v2097_v37, %v2755_v3  ;;  %v2100_v44 = vadd.f32 %v2099_v41, %v2098_v38 }
 0x225   :  { %2204 = vmatmul.mubr.bf16.gmra.mrb[84].mxu0 %v1002_v42 }
 0x226   :  { %v951_v45 = vmul.f32 0.22916667, %v865_v43  ;;  %v868_v46 = vadd.f32 %v2100_v44, %v2755_v3  ;;  %vm919_vm10 = vcmp.ge.f32.partialorder %v865_v43, 0.0 }
 0x228   :  { %vm920_vm11 = vcmp.ge.f32.partialorder %v868_v46, 0.0  ;;  %v952_v48 = vmul.f32 0.22916667, %v868_v46  ;;  %v2101_v49 = vpop.f32.mrb[52].mxu1  ;;  %v983_v53 = vsel %vm919_vm10, %v865_v43, %v951_v45 }
 0x229   :  { %v2102_v50 = vpop.f32.mrb[53].mxu1 }
 0x22a   :  { %v2103_v51 = vadd.f32 %v2102_v50, %v2101_v49  ;;  %v2104_v52 = vpop.f32.mrb[54].mxu1  ;;  %v984_v54 = vsel %vm920_vm11, %v868_v46, %v952_v48 }
 0x22b   :  { %v2105_v56 = vpop.f32.mrb[55].mxu1  ;;  %v1003_v57 = vpack.c.bf16 %v984_v54, %v983_v53 }
 0x22c   :  { %v873_v58 = vadd.f32 %v2103_v51, %v2755_v3  ;;  %v2106_v59 = vadd.f32 %v2105_v56, %v2104_v52 }
 0x22d   :  { %2207 = vmatprep.mubr.bf16.mxu0 %v1003_v57 }
 0x22e   :  { %v953_v60 = vmul.f32 0.22916667, %v873_v58  ;;  %v876_v61 = vadd.f32 %v2106_v59, %v2755_v3  ;;  %vm921_vm12 = vcmp.ge.f32.partialorder %v873_v58, 0.0 }
 0x230   :  { %vm922_vm13 = vcmp.ge.f32.partialorder %v876_v61, 0.0  ;;  %v954_v63 = vmul.f32 0.22916667, %v876_v61  ;;  %v2107_v0 = vpop.f32.mrb[56].mxu1  ;;  %v985_v4 = vsel %vm921_vm12, %v873_v58, %v953_v60 }
 0x231   :  { %v2108_v1 = vpop.f32.mrb[57].mxu1 }
 0x232   :  { %v2109_v2 = vadd.f32 %v2108_v1, %v2107_v0  ;;  %v2110_v17 = vpop.f32.mrb[58].mxu1  ;;  %v986_v5 = vsel %vm922_vm13, %v876_v61, %v954_v63 }
 0x233   :  { %v2111_v6 = vpop.f32.mrb[59].mxu1  ;;  %v1004_v7 = vpack.c.bf16 %v986_v5, %v985_v4 }
 0x234   :  { %v881_v8 = vadd.f32 %v2109_v2, %v2755_v3  ;;  %v2112_v9 = vadd.f32 %v2111_v6, %v2110_v17 }
 0x235   :  { %2208 = vmatmul.mubr.bf16.gmra.mrb[88].mxu0 %v1004_v7 }
 0x236   :  { %v955_v10 = vmul.f32 0.22916667, %v881_v8  ;;  %v884_v11 = vadd.f32 %v2112_v9, %v2755_v3  ;;  %vm923_vm14 = vcmp.ge.f32.partialorder %v881_v8, 0.0 }
 0x238   :  { %vm924_vm15 = vcmp.ge.f32.partialorder %v884_v11, 0.0  ;;  %v956_v12 = vmul.f32 0.22916667, %v884_v11  ;;  %v2113_v13 = vpop.f32.mrb[60].mxu1  ;;  %v987_v18 = vsel %vm923_vm14, %v881_v8, %v955_v10 }
 0x239   :  { %v2114_v14 = vpop.f32.mrb[61].mxu1 }
 0x23a   :  { %v2115_v15 = vadd.f32 %v2114_v14, %v2113_v13  ;;  %v2116_v16 = vpop.f32.mrb[62].mxu1  ;;  %v988_v19 = vsel %vm924_vm15, %v884_v11, %v956_v12 }
 0x23b   :  { %v2117_v20 = vpop.f32.mrb[63].mxu1  ;;  %v1005_v21 = vpack.c.bf16 %v988_v19, %v987_v18 }
 0x23c   :  { %v889_v22 = vadd.f32 %v2115_v15, %v2755_v3  ;;  %v2118_v23 = vadd.f32 %v2117_v20, %v2116_v16 }
 0x23d   :  { %2211 = vmatprep.mubr.bf16.mxu0 %v1005_v21 }
 0x23e   :  { %v957_v24 = vmul.f32 0.22916667, %v889_v22  ;;  %v892_v25 = vadd.f32 %v2118_v23, %v2755_v3  ;;  %vm925_vm0 = vcmp.ge.f32.partialorder %v889_v22, 0.0 }
 0x240   :  { %vm926_vm1 = vcmp.ge.f32.partialorder %v892_v25, 0.0  ;;  %v958_v26 = vmul.f32 0.22916667, %v892_v25  ;;  %v989_v27 = vsel %vm925_vm0, %v889_v22, %v957_v24 }
 0x242   :  { %v990_v28 = vsel %vm926_vm1, %v892_v25, %v958_v26 }
 0x243   :  { %v1006_v29 = vpack.c.bf16 %v990_v28, %v989_v27 }
 0x245   :  { %2212 = vmatmul.mubr.bf16.gmra.mrb[92].mxu0 %v1006_v29 }
 0x2a8   :  { %v2185_v31 = vpop.f32.mrb[64].mxu0 }
 0x2a9   :  { %v1121_v32 = vadd.f32 %v2185_v31, %v2816_v30  ;;  %v1112_v33 = vpop.f32.mrb[65].mxu0 }
 0x2aa   :  { %v1113_v34 = vadd.f32 %v2816_v30, %v1112_v33  ;;  %v2186_v35 = vpop.f32.mrb[66].mxu0 }
 0x2ab   :  { %v1273_v3 = vmul.f32 0.22916667, %v1121_v32  ;;  %v1124_v36 = vadd.f32 %v2186_v35, %v2816_v30  ;;  %v1115_v37 = vpop.f32.mrb[67].mxu0  ;;  %vm1241_vm2 = vcmp.ge.f32.partialorder %v1121_v32, 0.0 }
 0x2ac   :  { %v1271_v38 = vmul.f32 0.22916667, %v1113_v34  ;;  %v1116_v39 = vadd.f32 %v2816_v30, %v1115_v37  ;;  %vm1239_vm3 = vcmp.ge.f32.partialorder %v1113_v34, 0.0 }
 0x2ad   :  { %vm1242_vm4 = vcmp.ge.f32.partialorder %v1124_v36, 0.0  ;;  %v1274_v40 = vmul.f32 0.22916667, %v1124_v36  ;;  %v1305_v42 = vsel %vm1241_vm2, %v1121_v32, %v1273_v3 }
 0x2ae   :  { %vm1240_vm5 = vcmp.ge.f32.partialorder %v1116_v39, 0.0  ;;  %v1272_v41 = vmul.f32 0.22916667, %v1116_v39  ;;  %v1303_v45 = vsel %vm1239_vm3, %v1113_v34, %v1271_v38 }
 0x2af   :  { %v1306_v43 = vsel %vm1242_vm4, %v1124_v36, %v1274_v40 }
 0x2b0   :  { %v1336_v44 = vpack.c.bf16 %v1306_v43, %v1305_v42  ;;  %v1304_v46 = vsel %vm1240_vm5, %v1116_v39, %v1272_v41 }
 0x2b1   :  { %v1335_v47 = vpack.c.bf16 %v1304_v46, %v1303_v45 }
 0x2b3   :  { %2231 = vmatprep.mubr.bf16.mxu0 %v1335_v47 }
 0x2b4   :  { %2232 = vmatmul.mubr.bf16.vlgmr.msra.gmra.mrb[96].mxu0 %v1336_v44 }
 0x2b8   :  { %v2189_v48 = vpop.f32.mrb[68].mxu0 }
 0x2b9   :  { %v1137_v49 = vadd.f32 %v2189_v48, %v2816_v30  ;;  %v1128_v50 = vpop.f32.mrb[69].mxu0 }
 0x2ba   :  { %v1129_v51 = vadd.f32 %v2816_v30, %v1128_v50  ;;  %v2190_v52 = vpop.f32.mrb[70].mxu0 }
 0x2bb   :  { %v1277_v53 = vmul.f32 0.22916667, %v1137_v49  ;;  %v1140_v54 = vadd.f32 %v2190_v52, %v2816_v30  ;;  %v1131_v55 = vpop.f32.mrb[71].mxu0  ;;  %vm1245_vm6 = vcmp.ge.f32.partialorder %v1137_v49, 0.0 }
 0x2bc   :  { %v1275_v56 = vmul.f32 0.22916667, %v1129_v51  ;;  %v1132_v57 = vadd.f32 %v2816_v30, %v1131_v55  ;;  %vm1243_vm7 = vcmp.ge.f32.partialorder %v1129_v51, 0.0 }
 0x2bd   :  { %vm1246_vm8 = vcmp.ge.f32.partialorder %v1140_v54, 0.0  ;;  %v1278_v58 = vmul.f32 0.22916667, %v1140_v54  ;;  %v1309_v60 = vsel %vm1245_vm6, %v1137_v49, %v1277_v53 }
 0x2be   :  { %vm1244_vm9 = vcmp.ge.f32.partialorder %v1132_v57, 0.0  ;;  %v1276_v59 = vmul.f32 0.22916667, %v1132_v57  ;;  %v1307_v63 = vsel %vm1243_vm7, %v1129_v51, %v1275_v56 }
 0x2bf   :  { %v1310_v61 = vsel %vm1246_vm8, %v1140_v54, %v1278_v58 }
 0x2c0   :  { %v1338_v62 = vpack.c.bf16 %v1310_v61, %v1309_v60  ;;  %v1308_v0 = vsel %vm1244_vm9, %v1132_v57, %v1276_v59 }
 0x2c1   :  { %v1337_v1 = vpack.c.bf16 %v1308_v0, %v1307_v63 }
 0x2c3   :  { %2235 = vmatprep.mubr.bf16.mxu1 %v1337_v1 }
 0x2c4   :  { %2236 = vmatmul.mubr.bf16.vlgmr.msra.gmra.mrb[64].mxu1 %v1338_v62 }
 0x2c8   :  { %v2193_v2 = vpop.f32.mrb[72].mxu0 }
 0x2c9   :  { %v1153_v17 = vadd.f32 %v2193_v2, %v2816_v30  ;;  %v1144_v4 = vpop.f32.mrb[73].mxu0 }
 0x2ca   :  { %v1145_v5 = vadd.f32 %v2816_v30, %v1144_v4  ;;  %v2194_v6 = vpop.f32.mrb[74].mxu0 }
 0x2cb   :  { %v1281_v7 = vmul.f32 0.22916667, %v1153_v17  ;;  %v1156_v8 = vadd.f32 %v2194_v6, %v2816_v30  ;;  %v1147_v9 = vpop.f32.mrb[75].mxu0  ;;  %vm1249_vm10 = vcmp.ge.f32.partialorder %v1153_v17, 0.0 }
 0x2cc   :  { %v1279_v10 = vmul.f32 0.22916667, %v1145_v5  ;;  %v1148_v11 = vadd.f32 %v2816_v30, %v1147_v9  ;;  %vm1247_vm11 = vcmp.ge.f32.partialorder %v1145_v5, 0.0 }
 0x2cd   :  { %vm1250_vm12 = vcmp.ge.f32.partialorder %v1156_v8, 0.0  ;;  %v1282_v12 = vmul.f32 0.22916667, %v1156_v8  ;;  %v1313_v14 = vsel %vm1249_vm10, %v1153_v17, %v1281_v7 }
 0x2ce   :  { %vm1248_vm13 = vcmp.ge.f32.partialorder %v1148_v11, 0.0  ;;  %v1280_v13 = vmul.f32 0.22916667, %v1148_v11  ;;  %v1311_v16 = vsel %vm1247_vm11, %v1145_v5, %v1279_v10 }
 0x2cf   :  { %v1314_v15 = vsel %vm1250_vm12, %v1156_v8, %v1282_v12 }
 0x2d0   :  { %v1312_v18 = vsel %vm1248_vm13, %v1148_v11, %v1280_v13  ;;  %v1340_v19 = vpack.c.bf16 %v1314_v15, %v1313_v14 }
 0x2d1   :  { %v1339_v20 = vpack.c.bf16 %v1312_v18, %v1311_v16 }
 0x2d3   :  { %2239 = vmatprep.mubr.bf16.mxu1 %v1339_v20 }
 0x2d4   :  { %2240 = vmatmul.mubr.bf16.gmra.mrb[68].mxu1 %v1340_v19 }
 0x2d8   :  { %v2197_v21 = vpop.f32.mrb[76].mxu0 }
 0x2d9   :  { %v1169_v22 = vadd.f32 %v2197_v21, %v2816_v30  ;;  %v1160_v23 = vpop.f32.mrb[77].mxu0 }
 0x2da   :  { %v1161_v24 = vadd.f32 %v2816_v30, %v1160_v23  ;;  %v2198_v25 = vpop.f32.mrb[78].mxu0 }
 0x2db   :  { %v1285_v26 = vmul.f32 0.22916667, %v1169_v22  ;;  %v1172_v27 = vadd.f32 %v2198_v25, %v2816_v30  ;;  %v1163_v28 = vpop.f32.mrb[79].mxu0  ;;  %vm1253_vm14 = vcmp.ge.f32.partialorder %v1169_v22, 0.0 }
 0x2dc   :  { %v1283_v29 = vmul.f32 0.22916667, %v1161_v24  ;;  %v1164_v31 = vadd.f32 %v2816_v30, %v1163_v28  ;;  %vm1251_vm15 = vcmp.ge.f32.partialorder %v1161_v24, 0.0 }
 0x2dd   :  { %vm1254_vm0 = vcmp.ge.f32.partialorder %v1172_v27, 0.0  ;;  %v1286_v32 = vmul.f32 0.22916667, %v1172_v27  ;;  %v1317_v34 = vsel %vm1253_vm14, %v1169_v22, %v1285_v26 }
 0x2de   :  { %vm1252_vm1 = vcmp.ge.f32.partialorder %v1164_v31, 0.0  ;;  %v1284_v33 = vmul.f32 0.22916667, %v1164_v31  ;;  %v1315_v3 = vsel %vm1251_vm15, %v1161_v24, %v1283_v29 }
 0x2df   :  { %v1318_v35 = vsel %vm1254_vm0, %v1172_v27, %v1286_v32 }
 0x2e0   :  { %v1316_v36 = vsel %vm1252_vm1, %v1164_v31, %v1284_v33  ;;  %v1342_v37 = vpack.c.bf16 %v1318_v35, %v1317_v34 }
 0x2e1   :  { %v1341_v38 = vpack.c.bf16 %v1316_v36, %v1315_v3 }
 0x2e3   :  { %2243 = vmatprep.mubr.bf16.mxu1 %v1341_v38 }
 0x2e4   :  { %2244 = vmatmul.mubr.bf16.gmra.mrb[72].mxu1 %v1342_v37 }
 0x2e8   :  { %v2201_v39 = vpop.f32.mrb[80].mxu0 }
 0x2e9   :  { %v1185_v40 = vadd.f32 %v2201_v39, %v2816_v30  ;;  %v1176_v41 = vpop.f32.mrb[81].mxu0 }
 0x2ea   :  { %v1177_v42 = vadd.f32 %v2816_v30, %v1176_v41  ;;  %v2202_v43 = vpop.f32.mrb[82].mxu0 }
 0x2eb   :  { %v1289_v44 = vmul.f32 0.22916667, %v1185_v40  ;;  %v1188_v45 = vadd.f32 %v2202_v43, %v2816_v30  ;;  %v1179_v46 = vpop.f32.mrb[83].mxu0  ;;  %vm1257_vm2 = vcmp.ge.f32.partialorder %v1185_v40, 0.0 }
 0x2ec   :  { %v1287_v47 = vmul.f32 0.22916667, %v1177_v42  ;;  %v1180_v48 = vadd.f32 %v2816_v30, %v1179_v46  ;;  %vm1255_vm3 = vcmp.ge.f32.partialorder %v1177_v42, 0.0 }
 0x2ed   :  { %vm1258_vm4 = vcmp.ge.f32.partialorder %v1188_v45, 0.0  ;;  %v1290_v49 = vmul.f32 0.22916667, %v1188_v45  ;;  %v1321_v51 = vsel %vm1257_vm2, %v1185_v40, %v1289_v44 }
 0x2ee   :  { %vm1256_vm5 = vcmp.ge.f32.partialorder %v1180_v48, 0.0  ;;  %v1288_v50 = vmul.f32 0.22916667, %v1180_v48  ;;  %v1319_v53 = vsel %vm1255_vm3, %v1177_v42, %v1287_v47 }
 0x2ef   :  { %v1322_v52 = vsel %vm1258_vm4, %v1188_v45, %v1290_v49 }
 0x2f0   :  { %v1320_v54 = vsel %vm1256_vm5, %v1180_v48, %v1288_v50  ;;  %v1344_v55 = vpack.c.bf16 %v1322_v52, %v1321_v51  ;;  %v2853_v48 = vld [vmem:[%s2907_s8] ss:$0 sm:$0xff]  ;;  %s2412_s8 = smov [#allocation2]  }
 0x2f1   :  { %v1343_v56 = vpack.c.bf16 %v1320_v54, %v1319_v53  ;;  %s1780_s13 = sshll.u32 %s2412_s8, 4  ;;  %s1781_s13 = int_to_ptr.vmem [resolvable:$true] %s1780_s13 }
 0x2f2   :  { %s2387_s14 = scalar_lea.vmem %s1781_s13, 2048  ;;  %p2392_p1 = scmp.lt.s32.totalorder %s1781_s13, %s1781_s13 }
 0x2f3   :  { %2247 = vmatprep.mubr.bf16.mxu1 %v1343_v56  ;;  %p2388_p0 = scmp.ne.s32.totalorder %s1781_s13, %s2387_s14  ;;  %p2393_p2 = scmp.lt.s32.totalorder %s2387_s14, %s2387_s14 }
 0x2f4   :  { %2248 = vmatmul.mubr.bf16.gmra.mrb[76].mxu1 %v1344_v55 }
 0x2f5   :  { %p2394_p3 = por %p2393_p2, %p2392_p1 }
 0x2f7   :  { %p2395_p4 = pnand %p2394_p3, %p2388_p0 }
 0x2f8   :  { %v2205_v57 = vpop.f32.mrb[84].mxu0 }
 0x2f9   :  { %v1201_v58 = vadd.f32 %v2205_v57, %v2816_v30  ;;  %v1192_v59 = vpop.f32.mrb[85].mxu0 }
 0x2fa   :  { %v1193_v60 = vadd.f32 %v2816_v30, %v1192_v59  ;;  %v2206_v61 = vpop.f32.mrb[86].mxu0 }
 0x2fb   :  { %v1293_v62 = vmul.f32 0.22916667, %v1201_v58  ;;  %v1204_v63 = vadd.f32 %v2206_v61, %v2816_v30  ;;  %v1195_v0 = vpop.f32.mrb[87].mxu0  ;;  %vm1261_vm6 = vcmp.ge.f32.partialorder %v1201_v58, 0.0 }
 0x2fc   :  { %v1291_v1 = vmul.f32 0.22916667, %v1193_v60  ;;  %v1196_v2 = vadd.f32 %v2816_v30, %v1195_v0  ;;  %vm1259_vm7 = vcmp.ge.f32.partialorder %v1193_v60, 0.0 }
 0x2fd   :  { %vm1262_vm8 = vcmp.ge.f32.partialorder %v1204_v63, 0.0  ;;  %v1294_v17 = vmul.f32 0.22916667, %v1204_v63  ;;  %v1325_v5 = vsel %vm1261_vm6, %v1201_v58, %v1293_v62 }
 0x2fe   :  { %vm1260_vm9 = vcmp.ge.f32.partialorder %v1196_v2, 0.0  ;;  %v1292_v4 = vmul.f32 0.22916667, %v1196_v2  ;;  %v1323_v7 = vsel %vm1259_vm7, %v1193_v60, %v1291_v1 }
 0x2ff   :  { %v1326_v6 = vsel %vm1262_vm8, %v1204_v63, %v1294_v17 }
 0x300   :  { %v1324_v8 = vsel %vm1260_vm9, %v1196_v2, %v1292_v4  ;;  %v1346_v9 = vpack.c.bf16 %v1326_v6, %v1325_v5 }
 0x301   :  { %v1345_v10 = vpack.c.bf16 %v1324_v8, %v1323_v7 }
 0x303   :  { %2251 = vmatprep.mubr.bf16.mxu1 %v1345_v10 }
 0x304   :  { %2252 = vmatmul.mubr.bf16.gmra.mrb[80].mxu1 %v1346_v9 }
 0x308   :  { %v2209_v11 = vpop.f32.mrb[88].mxu0 }
 0x309   :  { %v1217_v12 = vadd.f32 %v2209_v11, %v2816_v30  ;;  %v1208_v13 = vpop.f32.mrb[89].mxu0 }
 0x30a   :  { %v1209_v14 = vadd.f32 %v2816_v30, %v1208_v13  ;;  %v2210_v15 = vpop.f32.mrb[90].mxu0 }
 0x30b   :  { %v1297_v16 = vmul.f32 0.22916667, %v1217_v12  ;;  %v1220_v18 = vadd.f32 %v2210_v15, %v2816_v30  ;;  %v1211_v19 = vpop.f32.mrb[91].mxu0  ;;  %vm1265_vm10 = vcmp.ge.f32.partialorder %v1217_v12, 0.0 }
 0x30c   :  { %v1295_v20 = vmul.f32 0.22916667, %v1209_v14  ;;  %v1212_v21 = vadd.f32 %v2816_v30, %v1211_v19  ;;  %vm1263_vm11 = vcmp.ge.f32.partialorder %v1209_v14, 0.0 }
 0x30d   :  { %vm1266_vm12 = vcmp.ge.f32.partialorder %v1220_v18, 0.0  ;;  %v1298_v22 = vmul.f32 0.22916667, %v1220_v18  ;;  %v1329_v24 = vsel %vm1265_vm10, %v1217_v12, %v1297_v16 }
 0x30e   :  { %vm1264_vm13 = vcmp.ge.f32.partialorder %v1212_v21, 0.0  ;;  %v1296_v23 = vmul.f32 0.22916667, %v1212_v21  ;;  %v1327_v26 = vsel %vm1263_vm11, %v1209_v14, %v1295_v20 }
 0x30f   :  { %v1330_v25 = vsel %vm1266_vm12, %v1220_v18, %v1298_v22 }
 0x310   :  { %v1328_v27 = vsel %vm1264_vm13, %v1212_v21, %v1296_v23  ;;  %v1348_v28 = vpack.c.bf16 %v1330_v25, %v1329_v24 }
 0x311   :  { %v1347_v29 = vpack.c.bf16 %v1328_v27, %v1327_v26 }
 0x313   :  { %2255 = vmatprep.mubr.bf16.mxu1 %v1347_v29 }
 0x314   :  { %2256 = vmatmul.mubr.bf16.gmra.mrb[84].mxu1 %v1348_v28 }
 0x318   :  { %v2213_v31 = vpop.f32.mrb[92].mxu0 }
 0x319   :  { %v1233_v32 = vadd.f32 %v2213_v31, %v2816_v30  ;;  %v1224_v33 = vpop.f32.mrb[93].mxu0 }
 0x31a   :  { %v1225_v34 = vadd.f32 %v2816_v30, %v1224_v33  ;;  %v2214_v35 = vpop.f32.mrb[94].mxu0 }
 0x31b   :  { %v1301_v3 = vmul.f32 0.22916667, %v1233_v32  ;;  %v1236_v36 = vadd.f32 %v2214_v35, %v2816_v30  ;;  %v1227_v37 = vpop.f32.mrb[95].mxu0  ;;  %vm1269_vm14 = vcmp.ge.f32.partialorder %v1233_v32, 0.0 }
 0x31c   :  { %v1299_v38 = vmul.f32 0.22916667, %v1225_v34  ;;  %v1228_v39 = vadd.f32 %v2816_v30, %v1227_v37  ;;  %vm1267_vm15 = vcmp.ge.f32.partialorder %v1225_v34, 0.0 }
 0x31d   :  { %vm1270_vm0 = vcmp.ge.f32.partialorder %v1236_v36, 0.0  ;;  %v1302_v40 = vmul.f32 0.22916667, %v1236_v36  ;;  %v1333_v42 = vsel %vm1269_vm14, %v1233_v32, %v1301_v3 }
 0x31e   :  { %vm1268_vm1 = vcmp.ge.f32.partialorder %v1228_v39, 0.0  ;;  %v1300_v41 = vmul.f32 0.22916667, %v1228_v39  ;;  %v1331_v44 = vsel %vm1267_vm15, %v1225_v34, %v1299_v38 }
 0x31f   :  { %v1334_v43 = vsel %vm1270_vm0, %v1236_v36, %v1302_v40 }
 0x320   :  { %v1332_v45 = vsel %vm1268_vm1, %v1228_v39, %v1300_v41  ;;  %v1350_v46 = vpack.c.bf16 %v1334_v43, %v1333_v42 }
 0x321   :  { %v1349_v47 = vpack.c.bf16 %v1332_v45, %v1331_v44 }
 0x323   :  { %2259 = vmatprep.mubr.bf16.mxu1 %v1349_v47 }
 0x324   :  { %2260 = vmatmul.mubr.bf16.gmra.mrb[88].mxu1 %v1350_v46 }
 0x387   :  { %v2233_v49 = vpop.f32.mrb[96].mxu0 }
 0x388   :  { %v1465_v30 = vadd.f32 %v2233_v49, %v2853_v48  ;;  %v1456_v50 = vpop.f32.mrb[97].mxu0 }
 0x389   :  { %v1457_v51 = vadd.f32 %v2853_v48, %v1456_v50  ;;  %v2234_v52 = vpop.f32.mrb[98].mxu0 }
 0x38a   :  { %2323 = vtanh.f32 %v1465_v30  ;;  %v1468_v53 = vadd.f32 %v2234_v52, %v2853_v48  ;;  %v1459_v54 = vpop.f32.mrb[99].mxu0 }
 0x38b   :  { %2325 = vtanh.f32 %v1457_v51  ;;  %v1460_v55 = vadd.f32 %v2853_v48, %v1459_v54 }
 0x38c   :  { %2327 = vtanh.f32 %v1468_v53 }
 0x38d   :  { %2329 = vtanh.f32 %v1460_v55 }
 0x394   :  { %v2324_v56 = vpop.eup %2323 }
 0x395   :  { %v2326_v57 = vpop.eup %2325 }
 0x396   :  { %v2328_v58 = vpop.eup %2327 }
 0x397   :  { %v2330_v59 = vpop.eup %2329  ;;  %v1920_v60 = vpack.c.bf16 %v2328_v58, %v2324_v56  ;;  %v2237_v61 = vpop.f32.mrb[64].mxu1 }
 0x398   :  { %v1915_v62 = vpack.c.bf16 %v2330_v59, %v2326_v57  ;;  %v1481_v63 = vadd.f32 %v2237_v61, %v2853_v48  ;;  %v1472_v0 = vpop.f32.mrb[65].mxu1 }
 0x399   :  { %1992 = vst [vmem:[#allocation2 + $0x8] sm:$0xff] %v1920_v60   ;;  %v1473_v1 = vadd.f32 %v2853_v48, %v1472_v0  ;;  %v2238_v2 = vpop.f32.mrb[66].mxu1 }
 0x39a   :  { %1916 = vst [vmem:[#allocation2] sm:$0xff] %v1915_v62   ;;  %2331 = vtanh.f32 %v1481_v63  ;;  %v1484_v17 = vadd.f32 %v2238_v2, %v2853_v48  ;;  %v1475_v4 = vpop.f32.mrb[67].mxu1 }
 0x39b   :  { %2333 = vtanh.f32 %v1473_v1  ;;  %v1476_v5 = vadd.f32 %v2853_v48, %v1475_v4 }
 0x39c   :  { %2335 = vtanh.f32 %v1484_v17 }
 0x39d   :  { %2337 = vtanh.f32 %v1476_v5 }
 0x3a4   :  { %v2332_v6 = vpop.eup %2331 }
 0x3a5   :  { %v2334_v7 = vpop.eup %2333 }
 0x3a6   :  { %v2336_v8 = vpop.eup %2335 }
 0x3a7   :  { %v2338_v9 = vpop.eup %2337  ;;  %v1930_v10 = vpack.c.bf16 %v2336_v8, %v2332_v6  ;;  %v2241_v11 = vpop.f32.mrb[68].mxu1 }
 0x3a8   :  { %v1925_v12 = vpack.c.bf16 %v2338_v9, %v2334_v7  ;;  %v1497_v13 = vadd.f32 %v2241_v11, %v2853_v48  ;;  %v1488_v14 = vpop.f32.mrb[69].mxu1 }
 0x3a9   :  { %1994 = vst [vmem:[#allocation2 + $0x18] sm:$0xff] %v1930_v10   ;;  %v1489_v15 = vadd.f32 %v2853_v48, %v1488_v14  ;;  %v2242_v16 = vpop.f32.mrb[70].mxu1 }
 0x3aa   :  { %1993 = vst [vmem:[#allocation2 + $0x10] sm:$0xff] %v1925_v12   ;;  %2339 = vtanh.f32 %v1497_v13  ;;  %v1500_v18 = vadd.f32 %v2242_v16, %v2853_v48  ;;  %v1491_v19 = vpop.f32.mrb[71].mxu1 }
 0x3ab   :  { %2341 = vtanh.f32 %v1489_v15  ;;  %v1492_v20 = vadd.f32 %v2853_v48, %v1491_v19 }
 0x3ac   :  { %2343 = vtanh.f32 %v1500_v18 }
 0x3ad   :  { %2345 = vtanh.f32 %v1492_v20 }
 0x3b4   :  { %v2340_v21 = vpop.eup %2339 }
 0x3b5   :  { %v2342_v22 = vpop.eup %2341 }
 0x3b6   :  { %v2344_v23 = vpop.eup %2343 }
 0x3b7   :  { %v2346_v24 = vpop.eup %2345  ;;  %v1940_v25 = vpack.c.bf16 %v2344_v23, %v2340_v21  ;;  %v2245_v26 = vpop.f32.mrb[72].mxu1 }
 0x3b8   :  { %v1935_v27 = vpack.c.bf16 %v2346_v24, %v2342_v22  ;;  %v1513_v28 = vadd.f32 %v2245_v26, %v2853_v48  ;;  %v1504_v29 = vpop.f32.mrb[73].mxu1 }
 0x3b9   :  { %1996 = vst [vmem:[#allocation2 + $0x28] sm:$0xff] %v1940_v25   ;;  %v1505_v31 = vadd.f32 %v2853_v48, %v1504_v29  ;;  %v2246_v32 = vpop.f32.mrb[74].mxu1 }
 0x3ba   :  { %1995 = vst [vmem:[#allocation2 + $0x20] sm:$0xff] %v1935_v27   ;;  %2347 = vtanh.f32 %v1513_v28  ;;  %v1516_v33 = vadd.f32 %v2246_v32, %v2853_v48  ;;  %v1507_v34 = vpop.f32.mrb[75].mxu1 }
 0x3bb   :  { %2349 = vtanh.f32 %v1505_v31  ;;  %v1508_v35 = vadd.f32 %v2853_v48, %v1507_v34 }
 0x3bc   :  { %2351 = vtanh.f32 %v1516_v33 }
 0x3bd   :  { %2353 = vtanh.f32 %v1508_v35 }
 0x3c4   :  { %v2348_v3 = vpop.eup %2347 }
 0x3c5   :  { %v2350_v36 = vpop.eup %2349 }
 0x3c6   :  { %v2352_v37 = vpop.eup %2351 }
 0x3c7   :  { %v2354_v38 = vpop.eup %2353  ;;  %v1950_v39 = vpack.c.bf16 %v2352_v37, %v2348_v3  ;;  %v2249_v40 = vpop.f32.mrb[76].mxu1 }
 0x3c8   :  { %v1945_v41 = vpack.c.bf16 %v2354_v38, %v2350_v36  ;;  %v1529_v42 = vadd.f32 %v2249_v40, %v2853_v48  ;;  %v1520_v43 = vpop.f32.mrb[77].mxu1 }
 0x3c9   :  { %1998 = vst [vmem:[#allocation2 + $0x38] sm:$0xff] %v1950_v39   ;;  %v1521_v44 = vadd.f32 %v2853_v48, %v1520_v43  ;;  %v2250_v45 = vpop.f32.mrb[78].mxu1 }
 0x3ca   :  { %1997 = vst [vmem:[#allocation2 + $0x30] sm:$0xff] %v1945_v41   ;;  %2355 = vtanh.f32 %v1529_v42  ;;  %v1532_v46 = vadd.f32 %v2250_v45, %v2853_v48  ;;  %v1523_v47 = vpop.f32.mrb[79].mxu1 }
 0x3cb   :  { %2357 = vtanh.f32 %v1521_v44  ;;  %v1524_v49 = vadd.f32 %v2853_v48, %v1523_v47 }
 0x3cc   :  { %2359 = vtanh.f32 %v1532_v46 }
 0x3cd   :  { %2361 = vtanh.f32 %v1524_v49 }
 0x3d4   :  { %v2356_v30 = vpop.eup %2355 }
 0x3d5   :  { %v2358_v50 = vpop.eup %2357 }
 0x3d6   :  { %v2360_v51 = vpop.eup %2359 }
 0x3d7   :  { %v2362_v52 = vpop.eup %2361  ;;  %v1960_v53 = vpack.c.bf16 %v2360_v51, %v2356_v30  ;;  %v2253_v54 = vpop.f32.mrb[80].mxu1 }
 0x3d8   :  { %v1955_v55 = vpack.c.bf16 %v2362_v52, %v2358_v50  ;;  %v1545_v56 = vadd.f32 %v2253_v54, %v2853_v48  ;;  %v1536_v57 = vpop.f32.mrb[81].mxu1 }
 0x3d9   :  { %2000 = vst [vmem:[#allocation2 + $0x48] sm:$0xff] %v1960_v53   ;;  %v1537_v58 = vadd.f32 %v2853_v48, %v1536_v57  ;;  %v2254_v59 = vpop.f32.mrb[82].mxu1 }
 0x3da   :  { %1999 = vst [vmem:[#allocation2 + $0x40] sm:$0xff] %v1955_v55   ;;  %2363 = vtanh.f32 %v1545_v56  ;;  %v1548_v60 = vadd.f32 %v2254_v59, %v2853_v48  ;;  %v1539_v61 = vpop.f32.mrb[83].mxu1 }
 0x3db   :  { %2365 = vtanh.f32 %v1537_v58  ;;  %v1540_v62 = vadd.f32 %v2853_v48, %v1539_v61 }
 0x3dc   :  { %2367 = vtanh.f32 %v1548_v60 }
 0x3dd   :  { %2369 = vtanh.f32 %v1540_v62 }
 0x3e4   :  { %v2364_v63 = vpop.eup %2363 }
 0x3e5   :  { %v2366_v0 = vpop.eup %2365 }
 0x3e6   :  { %v2368_v1 = vpop.eup %2367 }
 0x3e7   :  { %v2370_v2 = vpop.eup %2369  ;;  %v1970_v17 = vpack.c.bf16 %v2368_v1, %v2364_v63  ;;  %v2257_v4 = vpop.f32.mrb[84].mxu1 }
 0x3e8   :  { %v1965_v5 = vpack.c.bf16 %v2370_v2, %v2366_v0  ;;  %v1561_v6 = vadd.f32 %v2257_v4, %v2853_v48  ;;  %v1552_v7 = vpop.f32.mrb[85].mxu1 }
 0x3e9   :  { %2002 = vst [vmem:[#allocation2 + $0x58] sm:$0xff] %v1970_v17   ;;  %v1553_v8 = vadd.f32 %v2853_v48, %v1552_v7  ;;  %v2258_v9 = vpop.f32.mrb[86].mxu1 }
 0x3ea   :  { %2001 = vst [vmem:[#allocation2 + $0x50] sm:$0xff] %v1965_v5   ;;  %2371 = vtanh.f32 %v1561_v6  ;;  %v1564_v10 = vadd.f32 %v2258_v9, %v2853_v48  ;;  %v1555_v11 = vpop.f32.mrb[87].mxu1 }
 0x3eb   :  { %2373 = vtanh.f32 %v1553_v8  ;;  %v1556_v12 = vadd.f32 %v2853_v48, %v1555_v11 }
 0x3ec   :  { %2375 = vtanh.f32 %v1564_v10 }
 0x3ed   :  { %2377 = vtanh.f32 %v1556_v12 }
 0x3f4   :  { %v2372_v13 = vpop.eup %2371 }
 0x3f5   :  { %v2374_v14 = vpop.eup %2373 }
 0x3f6   :  { %v2376_v15 = vpop.eup %2375 }
 0x3f7   :  { %v2378_v16 = vpop.eup %2377  ;;  %v1980_v18 = vpack.c.bf16 %v2376_v15, %v2372_v13  ;;  %v2261_v19 = vpop.f32.mrb[88].mxu1 }
 0x3f8   :  { %v1975_v20 = vpack.c.bf16 %v2378_v16, %v2374_v14  ;;  %v1577_v21 = vadd.f32 %v2261_v19, %v2853_v48  ;;  %v1568_v22 = vpop.f32.mrb[89].mxu1 }
 0x3f9   :  { %2004 = vst [vmem:[#allocation2 + $0x68] sm:$0xff] %v1980_v18   ;;  %v1569_v23 = vadd.f32 %v2853_v48, %v1568_v22  ;;  %v2262_v24 = vpop.f32.mrb[90].mxu1 }
 0x3fa   :  { %2003 = vst [vmem:[#allocation2 + $0x60] sm:$0xff] %v1975_v20   ;;  %2379 = vtanh.f32 %v1577_v21  ;;  %v1580_v25 = vadd.f32 %v2262_v24, %v2853_v48  ;;  %v1571_v26 = vpop.f32.mrb[91].mxu1 }
 0x3fb   :  { %2381 = vtanh.f32 %v1569_v23  ;;  %v1572_v27 = vadd.f32 %v2853_v48, %v1571_v26 }
 0x3fc   :  { %2383 = vtanh.f32 %v1580_v25 }
 0x3fd   :  { %2385 = vtanh.f32 %v1572_v27 }
 0x404   :  { %v2380_v28 = vpop.eup %2379 }
 0x405   :  { %v2382_v29 = vpop.eup %2381 }
 0x406   :  { %v2384_v31 = vpop.eup %2383 }
 0x407   :  { %v2386_v32 = vpop.eup %2385  ;;  %v1990_v33 = vpack.c.bf16 %v2384_v31, %v2380_v28 }
 0x408   :  { %v1985_v34 = vpack.c.bf16 %v2386_v32, %v2382_v29 }
 0x409   :  { %2006 = vst [vmem:[#allocation2 + $0x78] sm:$0xff] %v1990_v33  }
 0x40a   :  { %2005 = vst [vmem:[#allocation2 + $0x70] sm:$0xff] %v1985_v34  }
 0x40b   :  { %2398 = shalt.err (!%p2395_p4)
}
 0x40c   :  { %s2399_s17 = scalar_lea.hbm %s2908_s9, 2048 }
 0x40d   :  { %p2400_p5 = scmp.ne.s32.totalorder %s2908_s9, %s2399_s17  ;;  %p2403_p6 = scmp.lt.u32.totalorder %s2399_s17, %s2908_s9 }
 0x40f   :  { %p2405_p7 = pnand %p2403_p6, %p2400_p5 }
 0x411   :  { %2408 = shalt.err (!%p2405_p7)
}
 0x412   :  { %s2413_s20 = smov 64   ;;  %s2414_s21 = smov 4  }
 0x413   :  { %1786 = dma.vmem_to_hbm [thread:$0]  %s1781_s13, 2048, %s2908_s9, [#allocation3], %s2413_s20, %s2413_s20, %s2414_s21  }
 0x414   :  { %2409 = dma.done.wait [#allocation3], 2048  }
 0x415   :  { %2410 = vsyncadd [#allocation3], 4294965248 }
 0x416   :  { %1790 = vsyncpa [#allocation3], 1 }

</bundles_post_ra>
